<compile_context>
chip_gen: v6e
topology: v6e:2x2x1
jax: 0.10.0
libtpu: 0.0.40
codegen_flags: <defaults>
</compile_context>

<pallas_src>
import functools

import jax
import jax.numpy as jnp
from jax.experimental import pallas as pl
from jax.experimental.pallas import tpu as pltpu

D_MODEL = 768
EPS = 1e-5


def _round_up(n, m):
    return ((n + m - 1) // m) * m


def _pick_tile_rows(rows, tile_rows, *, min_tiles=2, align=8):
    """Clamp the row tile: multiple of `align`, not larger than needed, and
    (when possible) small enough that the parallel row axis has >= min_tiles
    steps so both v7x TensorCores get work (free no-op on v5e/v6e)."""
    tr = min(tile_rows, _round_up(rows, align))
    if rows > align * min_tiles and pl.cdiv(rows, tr) < min_tiles:
        tr = _round_up(pl.cdiv(rows, min_tiles), align)
    return max(align, tr)


# --------------------------------------------------------------------------
# Kernel 1: residual add + LayerNorm (generic sublayer, y computed in JAX)
# --------------------------------------------------------------------------
def _residual_ln_kernel(x_ref, y_ref, gamma_ref, beta_ref, o_ref):
    # x_ref, y_ref: (TR, D) tiles; gamma/beta: (1, D).  All LN math in f32.
    s = x_ref[...].astype(jnp.float32) + y_ref[...].astype(jnp.float32)
    mean = jnp.mean(s, axis=-1, keepdims=True)
    var = jnp.maximum(jnp.mean(s * s, axis=-1, keepdims=True) - mean * mean, 0.0)
    inv = jax.lax.rsqrt(var + EPS)
    o_ref[...] = (
        (s - mean) * (inv * gamma_ref[...].astype(jnp.float32))
        + beta_ref[...].astype(jnp.float32)
    ).astype(o_ref.dtype)


@functools.partial(jax.jit, static_argnames=("tile_rows", "vmem_limit_bytes"))
def _fused_add_layernorm(x2d, y2d, gamma, beta, *, tile_rows=512,
                         vmem_limit_bytes=None):
    rows, d = x2d.shape
    # 512 rows f32: 3 arrays * 512*768*4 B * 2 buffers ~= 9 MiB -> under the
    # 16 MiB v5e scoped default; do NOT blindly raise to 2048 on v7x (64 MiB
    # physical VMEM) -- 512 is already ~85% of HBM roofline.
    tr = _pick_tile_rows(rows, tile_rows)
    grid = (pl.cdiv(rows, tr),)  # ragged tail handled via masked partial block

    cparams = dict(dimension_semantics=("parallel",))  # megacore-shardable
    if vmem_limit_bytes is not None:
        cparams["vmem_limit_bytes"] = vmem_limit_bytes

    return pl.pallas_call(
        _residual_ln_kernel,
        out_shape=jax.ShapeDtypeStruct((rows, d), x2d.dtype),
        grid_spec=pltpu.PrefetchScalarGridSpec(
            num_scalar_prefetch=0,
            grid=grid,
            in_specs=[
                pl.BlockSpec((tr, d), lambda i: (i, 0)),
                pl.BlockSpec((tr, d), lambda i: (i, 0)),
                pl.BlockSpec((1, d), lambda i: (0, 0)),
                pl.BlockSpec((1, d), lambda i: (0, 0)),
            ],
            out_specs=pl.BlockSpec((tr, d), lambda i: (i, 0)),
        ),
        compiler_params=pltpu.CompilerParams(**cparams),
    )(x2d, y2d, gamma, beta)


def residual_connection(x, sublayer, gamma, beta, *, tile_rows=512):
    """LayerNorm(x + dropout(sublayer(x))), dropout == identity (eval)."""
    # TODO(synk): train-mode dropout would need pltpu.prng_seed/prng_random_bits
    # inside this kernel to stay single-pass; inference uses identity.
    y = sublayer(x)  # arbitrary sublayer -> plain JAX glue
    b, s, d = x.shape
    rows = b * s
    out2d = _fused_add_layernorm(
        x.reshape(rows, d), y.reshape(rows, d),
        gamma.reshape(1, d), beta.reshape(1, d),
        tile_rows=tile_rows,
    )
    return out2d.reshape(b, s, d)


# --------------------------------------------------------------------------
# Kernel 2: fused Linear sublayer + residual add + LayerNorm epilogue
#   out = LayerNorm(x + (x @ W + bias))
#   W is VMEM-resident (single grid axis over row tiles); the x tile is both
#   the MXU LHS and the residual -> x is read from HBM exactly once.
# --------------------------------------------------------------------------
def _fused_linear_residual_ln_kernel(x_ref, w_ref, b_ref, g_ref, beta_ref,
                                     o_ref):
    x = x_ref[...]
    y = jnp.dot(x, w_ref[...], preferred_element_type=jnp.float32)  # MXU
    s = x.astype(jnp.float32) + y + b_ref[...].astype(jnp.float32)
    mean = jnp.mean(s, axis=-1, keepdims=True)
    var = jnp.maximum(jnp.mean(s * s, axis=-1, keepdims=True) - mean * mean, 0.0)
    inv = jax.lax.rsqrt(var + EPS)
    o_ref[...] = (
        (s - mean) * (inv * g_ref[...].astype(jnp.float32))
        + beta_ref[...].astype(jnp.float32)
    ).astype(o_ref.dtype)


@functools.partial(jax.jit, static_argnames=("tile_rows", "vmem_limit_bytes"))
def _fused_linear_residual_layernorm(x2d, W, bias, gamma, beta, *,
                                     tile_rows=512, vmem_limit_bytes=None):
    rows, d = x2d.shape
    assert W.shape == (d, d)
    assert d % 128 == 0, "d_model must be lane-aligned (768 is)"
    # VMEM @ tr=512 f32: x/out tiles 2 * 1.5 MiB * 2 bufs = 6 MiB, W 2.25 MiB
    # (x2 bufs = 4.5 MiB), params negligible -> ~10.5 MiB, safe everywhere.
    tr = _pick_tile_rows(rows, tile_rows)
    grid = (pl.cdiv(rows, tr),)

    cparams = dict(dimension_semantics=("parallel",))
    if vmem_limit_bytes is not None:
        cparams["vmem_limit_bytes"] = vmem_limit_bytes

    return pl.pallas_call(
        _fused_linear_residual_ln_kernel,
        out_shape=jax.ShapeDtypeStruct((rows, d), x2d.dtype),
        grid_spec=pltpu.PrefetchScalarGridSpec(
            num_scalar_prefetch=0,
            grid=grid,
            in_specs=[
                pl.BlockSpec((tr, d), lambda i: (i, 0)),  # x: LHS + residual
                pl.BlockSpec((d, d), lambda i: (0, 0)),   # W: VMEM-resident
                pl.BlockSpec((1, d), lambda i: (0, 0)),   # bias
                pl.BlockSpec((1, d), lambda i: (0, 0)),   # gamma
                pl.BlockSpec((1, d), lambda i: (0, 0)),   # beta
            ],
            out_specs=pl.BlockSpec((tr, d), lambda i: (i, 0)),
        ),
        compiler_params=pltpu.CompilerParams(**cparams),
    )(x2d, W, bias, gamma, beta)


def residual_connection_linear(x, W, bias, gamma, beta, *, tile_rows=512):
    """LayerNorm(x + (x @ W + bias)) fully fused (Linear sublayer fast path)."""
    b, s, d = x.shape
    rows = b * s
    out2d = _fused_linear_residual_layernorm(
        x.reshape(rows, d), W, bias.reshape(1, d),
        gamma.reshape(1, d), beta.reshape(1, d),
        tile_rows=tile_rows,
    )
    return out2d.reshape(b, s, d)


# --------------------------------------------------------------------------
# Reference + demo
# --------------------------------------------------------------------------
def _reference(x, y, gamma, beta):
    s = (x + y).astype(jnp.float32)
    mean = jnp.mean(s, axis=-1, keepdims=True)
    var = jnp.mean((s - mean) ** 2, axis=-1, keepdims=True)
    return ((s - mean) * jax.lax.rsqrt(var + EPS)) * gamma.astype(jnp.float32) \
        + beta.astype(jnp.float32)


if __name__ == "__main__":
    key = jax.random.PRNGKey(0)
    kx, kw, kb = jax.random.split(key, 3)

    # ViT-ish shapes kept small: batch=2, seq = (160/16)^2 + 1 = 101, d_model=768
    B, S, D = 2, 101, D_MODEL
    x = jax.random.normal(kx, (B, S, D), dtype=jnp.float32)

    # Deterministic "sublayer": a Linear layer (stands in for attention / FFN).
    limit = (6.0 / (D + D)) ** 0.5  # xavier_uniform-style bound
    W = jax.random.uniform(kw, (D, D), minval=-limit, maxval=limit,
                           dtype=jnp.float32)
    b = jax.random.uniform(kb, (D,), minval=-0.01, maxval=0.01,
                           dtype=jnp.float32)
    sublayer = lambda t: jnp.einsum("bsd,de->bse", t, W) + b

    # nn.LayerNorm default init (xavier init only touches p.dim() > 1)
    gamma = jnp.ones((D,), dtype=jnp.float32)
    beta = jnp.zeros((D,), dtype=jnp.float32)

    ref = _reference(x, sublayer(x), gamma, beta)

    # 1) generic path (any sublayer): fused residual add + LayerNorm
    out = jax.block_until_ready(residual_connection(x, sublayer, gamma, beta))
    assert out.shape == (B, S, D)
    assert jnp.allclose(out, ref, atol=1e-4, rtol=1e-4), "generic path mismatch"

    # exercise multi-step grid + ragged tail (202 rows, 64-row tiles)
    out_small = jax.block_until_ready(
        residual_connection(x, sublayer, gamma, beta, tile_rows=64))
    assert jnp.allclose(out_small, ref, atol=1e-4, rtol=1e-4), "ragged tail mismatch"

    # 2) fused Linear-sublayer path (VMEM-resident W, single x read)
    out_fused = jax.block_until_ready(
        residual_connection_linear(x, W, b, gamma, beta))
    assert jnp.allclose(out_fused, ref, atol=1e-4, rtol=1e-4), "fused path mismatch"

    # 3) bf16 activations/weights in HBM (halves traffic, bf16-native MXU on
    #    v6e/v7x); LN math stays f32 inside the kernel.
    xb, Wb, bb = (t.astype(jnp.bfloat16) for t in (x, W, b))
    gb, betab = gamma.astype(jnp.bfloat16), beta.astype(jnp.bfloat16)
    out_bf16 = jax.block_until_ready(
        residual_connection_linear(xb, Wb, bb, gb, betab))
    assert out_bf16.dtype == jnp.bfloat16
    assert jnp.allclose(out_bf16.astype(jnp.float32), ref,
                        atol=6e-2, rtol=6e-2), "bf16 fused path mismatch"

    print("KERNEL_OK")
</pallas_src>

<mosaic_0001>
module attributes {stable_mosaic.version = 11 : i64} {
  func.func @_residual_ln_kernel(%arg0: i32, %arg1: memref<104x768xf32, #tpu.memory_space<vmem>>, %arg2: memref<104x768xf32, #tpu.memory_space<vmem>>, %arg3: memref<1x768xf32, #tpu.memory_space<vmem>>, %arg4: memref<1x768xf32, #tpu.memory_space<vmem>>, %arg5: memref<104x768xf32, #tpu.memory_space<vmem>>) attributes {dimension_semantics = [#tpu.dimension_semantics<parallel>], iteration_bounds = array<i64: 2>, scalar_prefetch = 0 : i64, scratch_operands = 0 : i64, tpu.core_type = #tpu.core_type<tc>, window_params = [{transform_indices = @transform_0, window_bounds = array<i64: 104, 768>}, {transform_indices = @transform_1, window_bounds = array<i64: 104, 768>}, {pipeline_mode = #tpu.pipeline_mode<synchronous>, transform_indices = @transform_2, window_bounds = array<i64: 1, 768>}, {pipeline_mode = #tpu.pipeline_mode<synchronous>, transform_indices = @transform_3, window_bounds = array<i64: 1, 768>}, {transform_indices = @transform_4, window_bounds = array<i64: 104, 768>}]} {
    %c0 = arith.constant 0 : index
    %c0_0 = arith.constant 0 : index
    %0 = vector.load %arg1[%c0, %c0_0] : memref<104x768xf32, #tpu.memory_space<vmem>>, vector<104x768xf32>
    %c0_1 = arith.constant 0 : index
    %c0_2 = arith.constant 0 : index
    %1 = vector.load %arg2[%c0_1, %c0_2] : memref<104x768xf32, #tpu.memory_space<vmem>>, vector<104x768xf32>
    %2 = arith.addf %0, %1 : vector<104x768xf32>
    %cst = arith.constant dense<0.000000e+00> : vector<104xf32>
    %3 = vector.multi_reduction <add>, %2, %cst [1] : vector<104x768xf32> to vector<104xf32>
    %4 = vector.shape_cast %3 : vector<104xf32> to vector<104x1xf32>
    %cst_3 = arith.constant 7.680000e+02 : f32
    %5 = vector.broadcast %cst_3 : f32 to vector<104x1xf32>
    %6 = arith.divf %4, %5 : vector<104x1xf32>
    %7 = arith.mulf %2, %2 : vector<104x768xf32>
    %cst_4 = arith.constant dense<0.000000e+00> : vector<104xf32>
    %8 = vector.multi_reduction <add>, %7, %cst_4 [1] : vector<104x768xf32> to vector<104xf32>
    %9 = vector.shape_cast %8 : vector<104xf32> to vector<104x1xf32>
    %cst_5 = arith.constant 7.680000e+02 : f32
    %10 = vector.broadcast %cst_5 : f32 to vector<104x1xf32>
    %11 = arith.divf %9, %10 : vector<104x1xf32>
    %12 = arith.mulf %6, %6 : vector<104x1xf32>
    %13 = arith.subf %11, %12 : vector<104x1xf32>
    %cst_6 = arith.constant 0.000000e+00 : f32
    %14 = vector.broadcast %cst_6 : f32 to vector<104x1xf32>
    %15 = arith.maximumf %13, %14 : vector<104x1xf32>
    %cst_7 = arith.constant 9.99999974E-6 : f32
    %16 = vector.broadcast %cst_7 : f32 to vector<104x1xf32>
    %17 = arith.addf %15, %16 : vector<104x1xf32>
    %18 = math.rsqrt %17 : vector<104x1xf32>
    %19 = vector.broadcast %6 : vector<104x1xf32> to vector<104x768xf32>
    %20 = arith.subf %2, %19 : vector<104x768xf32>
    %c0_8 = arith.constant 0 : index
    %c0_9 = arith.constant 0 : index
    %21 = vector.load %arg3[%c0_8, %c0_9] : memref<1x768xf32, #tpu.memory_space<vmem>>, vector<1x768xf32>
    %22 = vector.broadcast %18 : vector<104x1xf32> to vector<104x768xf32>
    %23 = vector.broadcast %21 : vector<1x768xf32> to vector<104x768xf32>
    %24 = arith.mulf %22, %23 : vector<104x768xf32>
    %25 = arith.mulf %20, %24 : vector<104x768xf32>
    %c0_10 = arith.constant 0 : index
    %c0_11 = arith.constant 0 : index
    %26 = vector.load %arg4[%c0_10, %c0_11] : memref<1x768xf32, #tpu.memory_space<vmem>>, vector<1x768xf32>
    %27 = vector.broadcast %26 : vector<1x768xf32> to vector<104x768xf32>
    %28 = arith.addf %25, %27 : vector<104x768xf32>
    %c0_12 = arith.constant 0 : index
    %c0_13 = arith.constant 0 : index
    %29 = vector.load %arg5[%c0_12, %c0_13] : memref<104x768xf32, #tpu.memory_space<vmem>>, vector<104x768xf32>
    tpu.vector_store %arg5[%c0_12, %c0_13], %28 {strides = array<i32>} : memref<104x768xf32, #tpu.memory_space<vmem>>, vector<104x768xf32>,
    return
  }
  func.func @transform_0(%arg0: i32) -> (i32, i32) {
    %c0_i32 = arith.constant 0 : i32
    %c0_i32_0 = arith.constant 0 : i32
    return %arg0, %c0_i32 : i32, i32
  }
  func.func @transform_1(%arg0: i32) -> (i32, i32) {
    %c0_i32 = arith.constant 0 : i32
    %c0_i32_0 = arith.constant 0 : i32
    return %arg0, %c0_i32 : i32, i32
  }
  func.func @transform_2(%arg0: i32) -> (i32, i32) {
    %c0_i32 = arith.constant 0 : i32
    %c0_i32_0 = arith.constant 0 : i32
    %c0_i32_1 = arith.constant 0 : i32
    return %c0_i32, %c0_i32_0 : i32, i32
  }
  func.func @transform_3(%arg0: i32) -> (i32, i32) {
    %c0_i32 = arith.constant 0 : i32
    %c0_i32_0 = arith.constant 0 : i32
    %c0_i32_1 = arith.constant 0 : i32
    return %c0_i32, %c0_i32_0 : i32, i32
  }
  func.func @transform_4(%arg0: i32) -> (i32, i32) {
    %c0_i32 = arith.constant 0 : i32
    %c0_i32_0 = arith.constant 0 : i32
    return %arg0, %c0_i32 : i32, i32
  }
}

</mosaic_0001>

<bundles_post_ra>
// kernel: _fused_add_layernorm.1
= control target key start
LH: loop header
LB: loop body
LE: loop exit
PB: predicated region body
PF: predicated region fallthrough
CT: control target
= control target key end

     0   :  { %s3407_s0 = inlined_call_operand.hbm [shape: f32[202,768], index: 0, kind: input, shape index: {}]   ;;  %s3408_s1 = inlined_call_operand.hbm [shape: f32[202,768], index: 1, kind: input, shape index: {}]   ;;  %s3409_s2 = inlined_call_operand.hbm [shape: f32[1,768], index: 2, kind: input, shape index: {}]   ;;  %s3410_s3 = inlined_call_operand.hbm [shape: f32[1,768], index: 3, kind: input, shape index: {}]   ;;  %s3411_s4 = inlined_call_operand.hbm [shape: f32[202,768], index: 4, kind: output, shape index: {}]  }
   0x1   :  { %3552 = sst [smem:[#allocation88_spill]] %s3407_s0 }
   0x2   :  { %9 = vsyncpa [#allocation3], 0 }
   0x3   :  { %11 = vsyncpa [#allocation3 + $0x1], 0 }
   0x4   :  { %12 = vsyncpa [#allocation6], 0 }
   0x5   :  { %14 = vsyncpa [#allocation6 + $0x1], 0 }
   0x6   :  { %15 = vsyncpa [#allocation9], 0 }
   0x7   :  { %16 = vsyncpa [#allocation4], 0 }
   0x8   :  { %18 = vsyncpa [#allocation4 + $0x1], 0  ;;  %s1800_s15 = smov 0   ;;  %s1802_s16 = smov 0  }
   0x9   :  { %s1804_s17 = smov 0   ;;  %s1806_s18 = smov 0  }
   0xa LB: > { %s1821_s19 = sadd.s32 4294967295, %s1764_s18   ;;  %s1456_s20 = sadd.s32 4294967294, %s1764_s18   ;;  %s1764_s18 = sphi %s1806_s18, %s3824_s18   ;;  %s1760_s17 = sphi %s1804_s17, %s3823_s17   ;;  %s1756_s16 = sphi %s1802_s16, %s3822_s16   ;;  %s1752_s15 = sphi %s1800_s15, %s3821_s15  }
   0xb   : > { %s1825_s21 = sadd.s32 1, %s1764_s18   ;;  %s31_s22 = sadd.s32 1, %s1760_s17 }
   0xc   : > { %s28_s23 = ssub.s32 %s1764_s18, %s1825_s21  ;;  %p38_p0 = scmp.ne.s32.totalorder %s1760_s17, %s1756_s16 }
   0xd   : > { %p29_p1 = scmp.eq.s32.totalorder %s28_s23, 0  ;;  %p39_p2 = scmp.eq.s32.totalorder %s1764_s18, 0 }
   0xe   : > { %p44_p3 = scmp.ne.s32.totalorder %s1756_s16, %s1752_s15  ;;  %p3412_p4 = scmp.eq.s32.totalorder %s1821_s19, 0 }
   0xf   : > { %s1837_s24 = scalar_select %p29_p1, %s1760_s17, %s31_s22  }
  0x10   : > { %p1839_p5 = por %p39_p2, %p38_p0  ;;  %p1845_p6 = por %p3412_p4, %p44_p3 }
  0x11   : > { %p136_p7 = scmp.eq.s32.totalorder %s1821_s19, 1  ;;  %p142_p8 = scmp.eq.s32.totalorder %s1456_s20, 1 }
  0x12   : > { %s3554_s26 = scalar_select %p1845_p6, 1, 0 }
  0x13   : > { %p1457_p9 = scmp.ge.s32.totalorder %s1764_s18, 1  ;;  %p149_p10 = scmp.lt.s32.totalorder %s1764_s18, 3 }
  0x14   : > { %p1852_p11 = por %p136_p7, %p38_p0  ;;  %p1856_p12 = por %p142_p8, %p44_p3 }
  0x15   : > { %p1860_p13 = pnand %p1457_p9, %p149_p10  ;;  %s1766_s30 = smov [#allocation7]  }
  0x16   : > { %s3555_s27 = scalar_select %p1852_p11, 1, 0 }
  0x17   : > { %s3556_s28 = scalar_select %p1856_p12, 1, 0 }
  0x18   : > { %s3557_s29 = scalar_select %p1860_p13, 1, 0 }
  0x19   : > { %p1489_p2 = pneg %p1860_p13  ;;  %s162_s5 = sshll.u32 %s1766_s30, 4  ;;  %s163_s5 = int_to_ptr.vmem [resolvable:$true] %s162_s5 }
  0x1a   : > { %p1509_p4 = scmp.lt.s32.totalorder %s1764_s18, 2  ;;  %p3558_p0 = scmp.eq.s32.totalorder %s1821_s19, 0 }
  0x1b   : > { %s1767_s8 = smov [#allocation8]   ;;  %s1591_s10 = scalar_lea.vmem %s163_s5, 96 }
  0x1c   : > { %p1870_p7 = pnand %p1489_p2, %p3558_p0  ;;  %p1876_p3 = pnand %p1509_p4, %p1839_p5 }
  0x1d   : > { %s173_s9 = sshll.u32 %s1767_s8, 4  ;;  %p1592_p9 = scmp.ne.s32.totalorder %s163_s5, %s1591_s10  ;;  %s174_s9 = int_to_ptr.vmem [resolvable:$true] %s173_s9 }
  0x1e   : > { %p1582_p8 = pneg %p1870_p7  ;;  %p1599_p0 = scmp.lt.s32.totalorder %s163_s5, %s163_s5 }
  0x1f   : > { %p1600_p1 = scmp.lt.s32.totalorder %s1591_s10, %s1591_s10 }
  0x20   : > { %p1594_p10 = pnand %p1592_p9, %p1582_p8 }
  0x21   : > { %p1601_p12 = por %p1600_p1, %p1599_p0 }
  0x22   : > { %p1595_p2 = pneg %p1594_p10 }
  0x24   : > { %p1602_p11 = pnand %p1601_p12, %p1595_p2 }
  0x26   : > { %1605 = shalt.err (!%p1602_p11)
}
  0x27   : > { %1492 = dma.hbm_to_vmem [thread:$0]  (!%p1870_p7), %s3409_s2, 96, %s163_s5, [#allocation6]  }
  0x28   : > { %s1617_s13 = scalar_lea.vmem %s174_s9, 96  ;;  %p1625_p10 = scmp.lt.s32.totalorder %s174_s9, %s174_s9 }
  0x29   : > { %p1618_p4 = scmp.ne.s32.totalorder %s174_s9, %s1617_s13  ;;  %p1626_p6 = scmp.lt.s32.totalorder %s1617_s13, %s1617_s13 }
  0x2b   : > { %p1620_p5 = pnand %p1618_p4, %p1582_p8  ;;  %p1627_p13 = por %p1626_p6, %p1625_p10 }
  0x2d   : > { %p1621_p9 = pneg %p1620_p5 }
  0x2f   : > { %p1628_p1 = pnand %p1627_p13, %p1621_p9 }
  0x31   : > { %1631 = shalt.err (!%p1628_p1)
}
  0x32   : > { %1495 = dma.hbm_to_vmem [thread:$0]  (!%p1870_p7), %s3410_s3, 96, %s174_s9, [#allocation9]  }
  0x33   : > { %s184_s22 = sand.u32 1, %s1760_s17   ;;  %s1510_s23 = smul.u32 9984, %s1764_s18 }
  0x34   : > { %s1900_s25 = smul.u32 624, %s184_s22  ;;  %s3561_s0 = sld [smem:[#allocation88_spill]] }
  0x35   : > { %s206_s11 = sand.u32 1, %s1764_s18   ;;  %s1913_s9 = scalar_lea.sflag [#allocation3], %s184_s22 }
  0x36   : > { %s188_s8 = scalar_lea.vmem [#allocation2], %s1900_s25  ;;  %p1634_p11 = pneg %p1876_p3 }
  0x37   : > { %s196_s10 = sshll.u32 %s188_s8, 4  ;;  %s1911_s10 = int_to_ptr.vmem [resolvable:$true] %s196_s10 }
  0x3a   : > { %s1907_s6 = scalar_lea.hbm %s3561_s0, %s1510_s23  ;;  %s1637_s20 = scalar_lea.hbm %s3561_s0, 19968 }
  0x3b   : > { %s1632_s12 = scalar_lea.hbm %s1907_s6, 9984  ;;  %p1638_p7 = scmp.lt.s32.totalorder %s1907_s6, %s3561_s0 }
  0x3c   : > { %p1633_p6 = scmp.ne.s32.totalorder %s1907_s6, %s1632_s12  ;;  %p1639_p8 = scmp.lt.s32.totalorder %s1637_s20, %s1632_s12 }
  0x3e   : > { %p1635_p12 = pnand %p1634_p11, %p1633_p6  ;;  %p1640_p2 = por %p1639_p8, %p1638_p7 }
  0x40   : > { %p1636_p13 = pneg %p1635_p12 }
  0x42   : > { %p1641_p0 = pnand %p1640_p2, %p1636_p13 }
  0x44   : > { %1644 = shalt.err (!%p1641_p0)
}
  0x45   : > { %s1645_s22 = scalar_lea.vmem %s1911_s10, 9984  ;;  %s1768_s8 = smov [#allocation2]  }
  0x46   : > { %p1646_p4 = scmp.ne.s32.totalorder %s1911_s10, %s1645_s22  ;;  %s1650_s13 = sshll.u32 %s1768_s8, 4  ;;  %s1651_s13 = int_to_ptr.vmem [resolvable:$false] %s1650_s13 }
  0x47   : > { %s1652_s14 = scalar_lea.vmem %s1651_s13, 19968  ;;  %p1653_p10 = scmp.lt.s32.totalorder %s1911_s10, %s1651_s13 }
  0x48   : > { %p1648_p5 = pnand %p1646_p4, %p1634_p11  ;;  %p1654_p1 = scmp.lt.s32.totalorder %s1652_s14, %s1645_s22 }
  0x4a   : > { %p1649_p9 = pneg %p1648_p5  ;;  %p1655_p6 = por %p1654_p1, %p1653_p10 }
  0x4c   : > { %p1656_p12 = pnand %p1655_p6, %p1649_p9 }
  0x4e   : > { %1659 = shalt.err (!%p1656_p12)
}
  0x4f   : > { %s1769_s12 = smov 768   ;;  %s1770_s20 = smov 48  }
  0x50   : > { %1499 = dma.hbm_to_vmem [thread:$0]  (!%p1876_p3), %s1907_s6, 9984, %s1911_s10, %s1913_s9, %s1769_s12, %s1769_s12, %s1770_s20  }
  0x51   : > { %s1948_s22 = scalar_lea.hbm %s3408_s1, %s1510_s23  ;;  %s210_s8 = scalar_lea.vmem [#allocation5], %s1900_s25 }
  0x52   : > { %s218_s13 = sshll.u32 %s210_s8, 4  ;;  %s207_s14 = scalar_lea.sflag [#allocation6], %s206_s11  ;;  %s1951_s13 = int_to_ptr.vmem [resolvable:$true] %s218_s13 }
  0x53   : > { %s1660_s0 = scalar_lea.hbm %s1948_s22, 9984  ;;  %s1665_s23 = scalar_lea.hbm %s3408_s1, 19968 }
  0x54   : > { %p1661_p13 = scmp.ne.s32.totalorder %s1948_s22, %s1660_s0  ;;  %p1666_p2 = scmp.lt.s32.totalorder %s1948_s22, %s3408_s1 }
  0x55   : > { %p1667_p0 = scmp.lt.s32.totalorder %s1665_s23, %s1660_s0 }
  0x56   : > { %p1663_p7 = pnand %p1661_p13, %p1634_p11 }
  0x57   : > { %p1668_p4 = por %p1667_p0, %p1666_p2 }
  0x58   : > { %p1664_p8 = pneg %p1663_p7 }
  0x5a   : > { %p1669_p5 = pnand %p1668_p4, %p1664_p8 }
  0x5c   : > { %1672 = shalt.err (!%p1669_p5)
}
  0x5d   : > { %s1673_s25 = scalar_lea.vmem %s1951_s13, 9984  ;;  %s1771_s11 = smov [#allocation5]  }
  0x5e   : > { %p1674_p9 = scmp.ne.s32.totalorder %s1951_s13, %s1673_s25  ;;  %s1678_s5 = sshll.u32 %s1771_s11, 4  ;;  %s1679_s5 = int_to_ptr.vmem [resolvable:$false] %s1678_s5 }
  0x5f   : > { %s1680_s8 = scalar_lea.vmem %s1679_s5, 19968  ;;  %p1681_p6 = scmp.lt.s32.totalorder %s1951_s13, %s1679_s5 }
  0x60   : > { %p1676_p10 = pnand %p1674_p9, %p1634_p11  ;;  %p1682_p12 = scmp.lt.s32.totalorder %s1680_s8, %s1673_s25 }
  0x62   : > { %p1677_p1 = pneg %p1676_p10  ;;  %p1683_p13 = por %p1682_p12, %p1681_p6 }
  0x64   : > { %p1684_p7 = pnand %p1683_p13, %p1677_p1 }
  0x66   : > { %1687 = shalt.err (!%p1684_p7)
}
  0x67   : > { %1502 = dma.hbm_to_vmem [thread:$0]  (!%p1876_p3), %s1948_s22, 9984, %s1951_s13, %s207_s14, %s1769_s12, %s1769_s12, %s1770_s20  }
  0x68   : > { %p3562_p11 = scmp.ne.s32.totalorder %s3557_s29, 0 }
  0x6a   : > { %230 = sbr.rel (%p3562_p11) target bundleno = 467 (0x1d3), region = 36 }
  0x6f   : > { %s1983_s0 = sand.u32 1, %s1756_s16   ;;  %p3563_p8 = scmp.ne.s32.totalorder %s3554_s26, 0 }
  0x70   : > { %s1986_s6 = smul.u32 624, %s1983_s0  ;;  %s233_s10 = scalar_lea.sflag [#allocation3], %s1983_s0 }
  0x72   : > { %s1990_s7 = scalar_lea.vmem [#allocation2], %s1986_s6 }
  0x73   : > { %1731 = dma.done.wait (%p3563_p8), %s233_s10, 9984  }
  0x74   : > { %1733 = vsyncadd (%p3563_p8), %s233_s10, 4294957312  ;;  %s241_s29 = sand.u32 1, %s1821_s19   ;;  %s1998_s20 = scalar_lea.vmem [#allocation5], %s1986_s6 }
  0x75   : > { %s242_s12 = scalar_lea.sflag [#allocation6], %s241_s29 }
  0x76   : > { %1735 = dma.done.wait (%p3563_p8), %s242_s12, 9984  }
  0x77   : > { %1737 = vsyncadd (%p3563_p8), %s242_s12, 4294957312  ;;  %p3564_p3 = scmp.eq.s32.totalorder %s1821_s19, 0 }
  0x79   : > { %1739 = dma.done.wait (%p3564_p3), [#allocation6], 96   ;;  %p3565_p2 = pmov %p3564_p3 }
  0x7b   : > { %1741 = vsyncadd (%p3565_p2), [#allocation6], 4294967200  ;;  %p3566_p0 = pmov %p3565_p2 }
  0x7d   : > { %1743 = dma.done.wait (%p3566_p0), [#allocation9], 96   ;;  %p3567_p4 = pmov %p3566_p0 }
  0x7e   : > { %v298_v0 = vld [vmem:[%s1990_s7 + $0x60] sm:$0xff]  ;;  %v299_v1 = vld [vmem:[%s1990_s7 + $0x68] sm:$0xff]  ;;  %v300_v2 = vld [vmem:[%s1990_s7 + $0x70] sm:$0xff]  ;;  %s2869_s26 = scalar_lea.vmem [#allocation10], %s1986_s6  ;;  %s1514_s22 = smul.u32 9984, %s1821_s19 }
  0x7f   : > { %1745 = vsyncadd (%p3567_p4), [#allocation9], 4294967200  ;;  %v301_v3 = vld [vmem:[%s1990_s7 + $0x78] sm:$0xff]  ;;  %v302_v4 = vld [vmem:[%s1990_s7 + $0x80] sm:$0xff]  ;;  %s1341_s13 = sshll.u32 %s2869_s26, 4  ;;  %s1327_s9 = scalar_lea.sflag [#allocation4], %s1983_s0  ;;  %s3356_s13 = int_to_ptr.vmem [resolvable:$true] %s1341_s13 }
  0x80   : > { %v303_v5 = vld [vmem:[%s1990_s7 + $0x88] sm:$0xff]  ;;  %v376_v6 = vld [vmem:[%s1998_s20 + $0x60] sm:$0xff]  ;;  %v378_v8 = vld [vmem:[%s1998_s20 + $0x70] sm:$0xff]  ;;  %s3354_s23 = scalar_lea.hbm %s3411_s4, %s1514_s22  ;;  %s1688_s30 = scalar_lea.vmem %s3356_s13, 9984 }
  0x81   : > { %v377_v7 = vld [vmem:[%s1998_s20 + $0x68] sm:$0xff]  ;;  %v379_v9 = vld [vmem:[%s1998_s20 + $0x78] sm:$0xff]  ;;  %v380_v10 = vld [vmem:[%s1998_s20 + $0x80] sm:$0xff]  ;;  %v2024_v12 = vadd.f32 %v376_v6, %v298_v0  ;;  %v2028_v14 = vadd.f32 %v378_v8, %v300_v2  ;;  %p1689_p5 = scmp.ne.s32.totalorder %s3356_s13, %s1688_s30  ;;  %p3818_p9 = scmp.ne.s32.totalorder %s3555_s27, 0 }
  0x82   : > { %v381_v11 = vld [vmem:[%s1998_s20 + $0x88] sm:$0xff]  ;;  %v2026_v13 = vadd.f32 %v377_v7, %v299_v1  ;;  %v286_v15 = vld [vmem:[%s1990_s7] sm:$0xff]  ;;  %v288_v17 = vld [vmem:[%s1990_s7 + $0x10] sm:$0xff]  ;;  %v2033_v18 = vadd.f32 %v379_v9, %v301_v3  ;;  %v2040_v23 = vadd.f32 %v380_v10, %v302_v4  ;;  %s1772_s25 = smov [#allocation10]  }
  0x83   : > { %3568 = vst [vmem:[#allocation16_spill] sm:$0xff] %v2024_v12  ;;  %3570 = vst [vmem:[#allocation18_spill] sm:$0xff] %v2028_v14  ;;  %v287_v16 = vld [vmem:[%s1990_s7 + $0x8] sm:$0xff]  ;;  %v289_v20 = vld [vmem:[%s1990_s7 + $0x18] sm:$0xff]  ;;  %v2042_v24 = vadd.f32 %v381_v11, %v303_v5  ;;  %v637_v28 = vmul.f32 %v2024_v12, %v2024_v12  ;;  %v639_v40 = vmul.f32 %v2028_v14, %v2028_v14  ;;  %p1690_p10 = pnand %p1689_p5, %p3818_p9  ;;  %s1692_s11 = sshll.u32 %s1772_s25, 4  ;;  %s1693_s11 = int_to_ptr.vmem [resolvable:$false] %s1692_s11 }
  0x84   : > { %3569 = vst [vmem:[#allocation17_spill] sm:$0xff] %v2026_v13  ;;  %3571 = vst [vmem:[#allocation19_spill] sm:$0xff] %v2033_v18  ;;  %v534_v19 = vadd.f32 %v2026_v13, %v2024_v12  ;;  %v290_v21 = vld [vmem:[%s1990_s7 + $0x20] sm:$0xff]  ;;  %v291_v22 = vld [vmem:[%s1990_s7 + $0x28] sm:$0xff]  ;;  %v638_v29 = vmul.f32 %v2026_v13, %v2026_v13  ;;  %v2068_v41 = vmul.f32 %v2033_v18, %v2033_v18  ;;  %s1694_s5 = scalar_lea.vmem %s1693_s11, 19968  ;;  %p1695_p6 = scmp.lt.s32.totalorder %s3356_s13, %s1693_s11 }
  0x85   : > { %3572 = vst [vmem:[#allocation20_spill] sm:$0xff] %v2040_v23  ;;  %3573 = vst [vmem:[#allocation21_spill] sm:$0xff] %v2042_v24  ;;  %v364_v25 = vld [vmem:[%s1998_s20] sm:$0xff]  ;;  %v365_v26 = vld [vmem:[%s1998_s20 + $0x8] sm:$0xff]  ;;  %v2072_v42 = vmul.f32 %v2040_v23, %v2040_v23  ;;  %v2076_v43 = vmul.f32 %v2042_v24, %v2042_v24  ;;  %p1691_p1 = pneg %p1690_p10  ;;  %p1696_p12 = scmp.lt.s32.totalorder %s1694_s5, %s1688_s30 }
  0x86   : > { %v366_v27 = vld [vmem:[%s1998_s20 + $0x10] sm:$0xff]  ;;  %v535_v30 = vadd.f32 %v534_v19, %v2028_v14  ;;  %v367_v31 = vld [vmem:[%s1998_s20 + $0x18] sm:$0xff]  ;;  %v368_v32 = vld [vmem:[%s1998_s20 + $0x20] sm:$0xff]  ;;  %v2055_v34 = vadd.f32 %v364_v25, %v286_v15  ;;  %v2057_v35 = vadd.f32 %v365_v26, %v287_v16  ;;  %v717_v57 = vadd.f32 %v638_v29, %v637_v28 }
  0x87   : > { %v369_v33 = vld [vmem:[%s1998_s20 + $0x28] sm:$0xff]  ;;  %v2059_v36 = vadd.f32 %v366_v27, %v288_v17  ;;  %v304_v37 = vld [vmem:[%s1990_s7 + $0x90] sm:$0xff]  ;;  %v305_v38 = vld [vmem:[%s1990_s7 + $0x98] sm:$0xff]  ;;  %v2079_v45 = vadd.f32 %v367_v31, %v289_v20  ;;  %v2081_v46 = vadd.f32 %v368_v32, %v290_v21  ;;  %p1697_p13 = por %p1696_p12, %p1695_p6 }
  0x88   : > { %3574 = vst [vmem:[#allocation22_spill] sm:$0xff] %v2055_v34  ;;  %3575 = vst [vmem:[#allocation23_spill] sm:$0xff] %v2057_v35  ;;  %v306_v39 = vld [vmem:[%s1990_s7 + $0xa0] sm:$0xff]  ;;  %v536_v44 = vadd.f32 %v535_v30, %v2033_v18  ;;  %v520_v47 = vadd.f32 %v2057_v35, %v2055_v34  ;;  %v307_v48 = vld [vmem:[%s1990_s7 + $0xa8] sm:$0xff]  ;;  %v2088_v51 = vadd.f32 %v369_v33, %v291_v22 }
  0x89   : > { %3576 = vst [vmem:[#allocation24_spill] sm:$0xff] %v2059_v36  ;;  %3577 = vst [vmem:[#allocation25_spill] sm:$0xff] %v2079_v45  ;;  %v308_v49 = vld [vmem:[%s1990_s7 + $0xb0] sm:$0xff]  ;;  %v309_v50 = vld [vmem:[%s1990_s7 + $0xb8] sm:$0xff]  ;;  %v625_v55 = vmul.f32 %v2055_v34, %v2055_v34  ;;  %v626_v56 = vmul.f32 %v2057_v35, %v2057_v35  ;;  %v627_v5 = vmul.f32 %v2059_v36, %v2059_v36  ;;  %p1698_p7 = pnand %p1697_p13, %p1691_p1 }
  0x8a   : > { %3578 = vst [vmem:[#allocation26_spill] sm:$0xff] %v2081_v46  ;;  %3579 = vst [vmem:[#allocation27_spill] sm:$0xff] %v2088_v51  ;;  %v382_v52 = vld [vmem:[%s1998_s20 + $0x90] sm:$0xff]  ;;  %v383_v53 = vld [vmem:[%s1998_s20 + $0x98] sm:$0xff]  ;;  %v537_v58 = vadd.f32 %v536_v44, %v2040_v23  ;;  %v521_v59 = vadd.f32 %v520_v47, %v2059_v36  ;;  %v2115_v6 = vmul.f32 %v2079_v45, %v2079_v45 }
  0x8b   : > { %v384_v54 = vld [vmem:[%s1998_s20 + $0xa0] sm:$0xff]  ;;  %v385_v60 = vld [vmem:[%s1998_s20 + $0xa8] sm:$0xff]  ;;  %v386_v61 = vld [vmem:[%s1998_s20 + $0xb0] sm:$0xff]  ;;  %v2102_v63 = vadd.f32 %v382_v52, %v304_v37  ;;  %v2104_v0 = vadd.f32 %v383_v53, %v305_v38  ;;  %v2119_v7 = vmul.f32 %v2081_v46, %v2081_v46  ;;  %v2139_v26 = vmul.f32 %v2088_v51, %v2088_v51 }
  0x8c   : > { %v387_v62 = vld [vmem:[%s1998_s20 + $0xb8] sm:$0xff]  ;;  %v2106_v1 = vadd.f32 %v384_v54, %v306_v39  ;;  %v292_v2 = vld [vmem:[%s1990_s7 + $0x30] sm:$0xff]  ;;  %v294_v4 = vld [vmem:[%s1990_s7 + $0x40] sm:$0xff]  ;;  %v538_v8 = vadd.f32 %v537_v58, %v2042_v24  ;;  %v522_v9 = vadd.f32 %v521_v59, %v2079_v45  ;;  %v2123_v10 = vadd.f32 %v385_v60, %v307_v48 }
  0x8d   : > { %3580 = vst [vmem:[#allocation28_spill] sm:$0xff] %v2102_v63  ;;  %3581 = vst [vmem:[#allocation29_spill] sm:$0xff] %v2104_v0  ;;  %v293_v3 = vld [vmem:[%s1990_s7 + $0x38] sm:$0xff]  ;;  %v541_v11 = vadd.f32 %v2104_v0, %v2102_v63  ;;  %v295_v15 = vld [vmem:[%s1990_s7 + $0x48] sm:$0xff]  ;;  %v2130_v19 = vadd.f32 %v386_v61, %v308_v49  ;;  %v2132_v20 = vadd.f32 %v387_v62, %v309_v50 }
  0x8e   : > { %3582 = vst [vmem:[#allocation30_spill] sm:$0xff] %v2106_v1  ;;  %3583 = vst [vmem:[#allocation31_spill] sm:$0xff] %v2123_v10  ;;  %v296_v16 = vld [vmem:[%s1990_s7 + $0x50] sm:$0xff]  ;;  %v297_v17 = vld [vmem:[%s1990_s7 + $0x58] sm:$0xff]  ;;  %v703_v27 = vadd.f32 %v626_v56, %v625_v55  ;;  %539 = vadd.xlane.f32.xlu1 %v538_v8  ;;  %v523_v28 = vadd.f32 %v522_v9, %v2081_v46  ;;  %v718_v48 = vadd.f32 %v717_v57, %v639_v40 }
  0x8f   : > { %3584 = vst [vmem:[#allocation32_spill] sm:$0xff] %v2130_v19  ;;  %3585 = vst [vmem:[#allocation33_spill] sm:$0xff] %v2132_v20  ;;  %v370_v21 = vld [vmem:[%s1998_s20 + $0x30] sm:$0xff]  ;;  %v371_v22 = vld [vmem:[%s1998_s20 + $0x38] sm:$0xff]  ;;  %v542_v29 = vadd.f32 %v541_v11, %v2106_v1  ;;  %v2157_v49 = vmul.f32 %v2102_v63, %v2102_v63  ;;  %v2161_v50 = vmul.f32 %v2104_v0, %v2104_v0 }
  0x90   : > { %v372_v25 = vld [vmem:[%s1998_s20 + $0x40] sm:$0xff]  ;;  %v373_v30 = vld [vmem:[%s1998_s20 + $0x48] sm:$0xff]  ;;  %v374_v31 = vld [vmem:[%s1998_s20 + $0x50] sm:$0xff]  ;;  %v2146_v33 = vadd.f32 %v370_v21, %v292_v2  ;;  %v2148_v37 = vadd.f32 %v371_v22, %v293_v3  ;;  %v524_v52 = vadd.f32 %v523_v28, %v2088_v51  ;;  %v704_v2 = vadd.f32 %v703_v27, %v627_v5 }
  0x91   : > { %v375_v32 = vld [vmem:[%s1998_s20 + $0x58] sm:$0xff]  ;;  %v2150_v38 = vadd.f32 %v372_v25, %v294_v4  ;;  %v316_v39 = vld [vmem:[%s1990_s7 + $0xf0] sm:$0xff]  ;;  %v318_v47 = vld [vmem:[%s1990_s7 + $0x100] sm:$0xff]  ;;  %v543_v53 = vadd.f32 %v542_v29, %v2123_v10  ;;  %v2165_v54 = vadd.f32 %v373_v30, %v295_v15  ;;  %v2172_v58 = vadd.f32 %v374_v31, %v296_v16 }
  0x92   : > { %3586 = vst [vmem:[#allocation34_spill] sm:$0xff] %v2146_v33  ;;  %3587 = vst [vmem:[#allocation35_spill] sm:$0xff] %v2148_v37  ;;  %v317_v44 = vld [vmem:[%s1990_s7 + $0xf8] sm:$0xff]  ;;  %v527_v55 = vadd.f32 %v2148_v37, %v2146_v33  ;;  %v319_v40 = vld [vmem:[%s1990_s7 + $0x108] sm:$0xff]  ;;  %v2174_v59 = vadd.f32 %v375_v32, %v297_v17  ;;  %v2181_v3 = vmul.f32 %v2106_v1, %v2106_v1  ;;  %525 = vadd.xlane.f32.xlu0 %v524_v52 }
  0x93   : > { %3588 = vst [vmem:[#allocation36_spill] sm:$0xff] %v2150_v38  ;;  %3589 = vst [vmem:[#allocation37_spill] sm:$0xff] %v2165_v54  ;;  %v320_v56 = vld [vmem:[%s1990_s7 + $0x110] sm:$0xff]  ;;  %v321_v57 = vld [vmem:[%s1990_s7 + $0x118] sm:$0xff]  ;;  %v544_v4 = vadd.f32 %v543_v53, %v2130_v19  ;;  %v719_v27 = vadd.f32 %v718_v48, %v2068_v41  ;;  %v631_v28 = vmul.f32 %v2146_v33, %v2146_v33 }
  0x94   : > { %3590 = vst [vmem:[#allocation38_spill] sm:$0xff] %v2172_v58  ;;  %3591 = vst [vmem:[#allocation39_spill] sm:$0xff] %v2174_v59  ;;  %v394_v60 = vld [vmem:[%s1998_s20 + $0xf0] sm:$0xff]  ;;  %v395_v61 = vld [vmem:[%s1998_s20 + $0xf8] sm:$0xff]  ;;  %v528_v8 = vadd.f32 %v527_v55, %v2150_v38  ;;  %v632_v29 = vmul.f32 %v2148_v37, %v2148_v37 }
  0x95   : > { %v396_v62 = vld [vmem:[%s1998_s20 + $0x100] sm:$0xff]  ;;  %v397_v9 = vld [vmem:[%s1998_s20 + $0x108] sm:$0xff]  ;;  %v398_v11 = vld [vmem:[%s1998_s20 + $0x110] sm:$0xff]  ;;  %v2188_v16 = vadd.f32 %v394_v60, %v316_v39  ;;  %v2190_v17 = vadd.f32 %v395_v61, %v317_v44  ;;  %v545_v30 = vadd.f32 %v544_v4, %v2132_v20  ;;  %v2221_v61 = vmul.f32 %v2150_v38, %v2150_v38 }
  0x96   : > { %v399_v15 = vld [vmem:[%s1998_s20 + $0x118] sm:$0xff]  ;;  %v2192_v5 = vadd.f32 %v396_v62, %v318_v47  ;;  %v310_v21 = vld [vmem:[%s1990_s7 + $0xc0] sm:$0xff]  ;;  %v311_v22 = vld [vmem:[%s1990_s7 + $0xc8] sm:$0xff]  ;;  %v529_v31 = vadd.f32 %v528_v8, %v2165_v54  ;;  %v2204_v32 = vadd.f32 %v397_v9, %v319_v40  ;;  %v2211_v48 = vadd.f32 %v398_v11, %v320_v56 }
  0x97   : > { %3592 = vst [vmem:[#allocation40_spill] sm:$0xff] %v2188_v16  ;;  %3593 = vst [vmem:[#allocation41_spill] sm:$0xff] %v2190_v17  ;;  %v312_v25 = vld [vmem:[%s1990_s7 + $0xd0] sm:$0xff]  ;;  %v555_v39 = vadd.f32 %v2190_v17, %v2188_v16  ;;  %v313_v44 = vld [vmem:[%s1990_s7 + $0xd8] sm:$0xff]  ;;  %v2213_v52 = vadd.f32 %v399_v15, %v321_v57  ;;  %v705_v40 = vadd.f32 %v704_v2, %v2115_v6  ;;  %546 = vadd.xlane.f32.xlu1 %v545_v30 }
  0x98   : > { %3594 = vst [vmem:[#allocation42_spill] sm:$0xff] %v2192_v5  ;;  %3595 = vst [vmem:[#allocation43_spill] sm:$0xff] %v2204_v32  ;;  %v314_v41 = vld [vmem:[%s1990_s7 + $0xe0] sm:$0xff]  ;;  %v315_v47 = vld [vmem:[%s1990_s7 + $0xe8] sm:$0xff]  ;;  %v530_v62 = vadd.f32 %v529_v31, %v2172_v58  ;;  %v720_v31 = vadd.f32 %v719_v27, %v2072_v42 }
  0x99   : > { %3596 = vst [vmem:[#allocation44_spill] sm:$0xff] %v2211_v48  ;;  %3597 = vst [vmem:[#allocation45_spill] sm:$0xff] %v2213_v52  ;;  %v388_v53 = vld [vmem:[%s1998_s20 + $0xc0] sm:$0xff]  ;;  %v389_v55 = vld [vmem:[%s1998_s20 + $0xc8] sm:$0xff]  ;;  %v556_v56 = vadd.f32 %v555_v39, %v2192_v5  ;;  %v2240_v39 = vmul.f32 %v2165_v54, %v2165_v54 }
  0x9a   : > { %v390_v60 = vld [vmem:[%s1998_s20 + $0xd0] sm:$0xff]  ;;  %v391_v4 = vld [vmem:[%s1998_s20 + $0xd8] sm:$0xff]  ;;  %v392_v57 = vld [vmem:[%s1998_s20 + $0xe0] sm:$0xff]  ;;  %v2228_v9 = vadd.f32 %v388_v53, %v310_v21  ;;  %v2230_v11 = vadd.f32 %v389_v55, %v311_v22  ;;  %v2244_v21 = vmul.f32 %v2172_v58, %v2172_v58  ;;  %v531_v22 = vadd.f32 %v530_v62, %v2174_v59 }
  0x9b   : > { %v393_v8 = vld [vmem:[%s1998_s20 + $0xe8] sm:$0xff]  ;;  %v2232_v6 = vadd.f32 %v390_v60, %v312_v25  ;;  %v328_v2 = vld [vmem:[%s1990_s7 + $0x150] sm:$0xff]  ;;  %v329_v15 = vld [vmem:[%s1990_s7 + $0x158] sm:$0xff]  ;;  %v557_v25 = vadd.f32 %v556_v56, %v2204_v32  ;;  %v2248_v53 = vadd.f32 %v391_v4, %v313_v44  ;;  %v2255_v54 = vadd.f32 %v392_v57, %v314_v41 }
  0x9c   : > { %3598 = vst [vmem:[#allocation46_spill] sm:$0xff] %v2228_v9  ;;  %3599 = vst [vmem:[#allocation47_spill] sm:$0xff] %v2230_v11  ;;  %v330_v30 = vld [vmem:[%s1990_s7 + $0x160] sm:$0xff]  ;;  %v548_v55 = vadd.f32 %v2230_v11, %v2228_v9  ;;  %v331_v42 = vld [vmem:[%s1990_s7 + $0x168] sm:$0xff]  ;;  %v2257_v58 = vadd.f32 %v393_v8, %v315_v47  ;;  %v706_v44 = vadd.f32 %v705_v40, %v2119_v7  ;;  %532 = vadd.xlane.f32.xlu0 %v531_v22 }
  0x9d   : > { %3600 = vst [vmem:[#allocation48_spill] sm:$0xff] %v2232_v6  ;;  %3601 = vst [vmem:[#allocation49_spill] sm:$0xff] %v2248_v53  ;;  %v332_v27 = vld [vmem:[%s1990_s7 + $0x170] sm:$0xff]  ;;  %v333_v60 = vld [vmem:[%s1990_s7 + $0x178] sm:$0xff]  ;;  %v2265_v4 = vmul.f32 %v2174_v59, %v2174_v59  ;;  %v558_v37 = vadd.f32 %v557_v25, %v2211_v48  ;;  %v710_v59 = vadd.f32 %v632_v29, %v631_v28 }
  0x9e   : > { %3602 = vst [vmem:[#allocation50_spill] sm:$0xff] %v2255_v54  ;;  %3603 = vst [vmem:[#allocation51_spill] sm:$0xff] %v2257_v58  ;;  %v406_v62 = vld [vmem:[%s1998_s20 + $0x150] sm:$0xff]  ;;  %v407_v56 = vld [vmem:[%s1998_s20 + $0x158] sm:$0xff]  ;;  %v549_v41 = vadd.f32 %v548_v55, %v2232_v6  ;;  %v2282_v55 = vadd.f32 %v720_v31, %v2076_v43  ;;  %v649_v0 = vmul.f32 %v2228_v9, %v2228_v9 }
  0x9f   : > { %v408_v38 = vld [vmem:[%s1998_s20 + $0x160] sm:$0xff]  ;;  %v409_v57 = vld [vmem:[%s1998_s20 + $0x168] sm:$0xff]  ;;  %v410_v47 = vld [vmem:[%s1998_s20 + $0x170] sm:$0xff]  ;;  %v2272_v33 = vadd.f32 %v406_v62, %v328_v2  ;;  %v2274_v1 = vadd.f32 %v407_v56, %v329_v15  ;;  %v559_v2 = vadd.f32 %v558_v37, %v2213_v52  ;;  %v2326_v46 = vmul.f32 %v2248_v53, %v2248_v53 }
  0xa0   : > { %v411_v8 = vld [vmem:[%s1998_s20 + $0x178] sm:$0xff]  ;;  %v2276_v7 = vadd.f32 %v408_v38, %v330_v30  ;;  %v322_v40 = vld [vmem:[%s1990_s7 + $0x120] sm:$0xff]  ;;  %v323_v22 = vld [vmem:[%s1990_s7 + $0x128] sm:$0xff]  ;;  %v550_v15 = vadd.f32 %v549_v41, %v2248_v53  ;;  %v2288_v38 = vadd.f32 %v409_v57, %v331_v42  ;;  %v2295_v31 = vadd.f32 %v410_v47, %v332_v27 }
  0xa1   : > { %3604 = vst [vmem:[#allocation52_spill] sm:$0xff] %v2272_v33  ;;  %3605 = vst [vmem:[#allocation53_spill] sm:$0xff] %v2274_v1  ;;  %v324_v25 = vld [vmem:[%s1990_s7 + $0x130] sm:$0xff]  ;;  %v569_v30 = vadd.f32 %v2274_v1, %v2272_v33  ;;  %v325_v62 = vld [vmem:[%s1990_s7 + $0x138] sm:$0xff]  ;;  %v2297_v28 = vadd.f32 %v411_v8, %v333_v60  ;;  %v2303_v42 = vadd.f32 %v706_v44, %v2139_v26  ;;  %560 = vadd.xlane.f32.xlu1 %v559_v2 }
  0xa2   : > { %3606 = vst [vmem:[#allocation54_spill] sm:$0xff] %v2276_v7  ;;  %3607 = vst [vmem:[#allocation55_spill] sm:$0xff] %v2288_v38  ;;  %v326_v56 = vld [vmem:[%s1990_s7 + $0x140] sm:$0xff]  ;;  %v327_v43 = vld [vmem:[%s1990_s7 + $0x148] sm:$0xff]  ;;  %v650_v57 = vmul.f32 %v2230_v11, %v2230_v11  ;;  %v551_v9 = vadd.f32 %v550_v15, %v2255_v54  ;;  %v651_v11 = vmul.f32 %v2232_v6, %v2232_v6 }
  0xa3   : > { %3608 = vst [vmem:[#allocation56_spill] sm:$0xff] %v2295_v31  ;;  %3609 = vst [vmem:[#allocation57_spill] sm:$0xff] %v2297_v28  ;;  %v400_v37 = vld [vmem:[%s1998_s20 + $0x120] sm:$0xff]  ;;  %v401_v29 = vld [vmem:[%s1998_s20 + $0x128] sm:$0xff]  ;;  %v570_v27 = vadd.f32 %v569_v30, %v2276_v7  ;;  %v711_v30 = vadd.f32 %v710_v59, %v2221_v61 }
  0xa4   : > { %v402_v41 = vld [vmem:[%s1998_s20 + $0x130] sm:$0xff]  ;;  %v403_v47 = vld [vmem:[%s1998_s20 + $0x138] sm:$0xff]  ;;  %v404_v60 = vld [vmem:[%s1998_s20 + $0x140] sm:$0xff]  ;;  %v2312_v63 = vadd.f32 %v400_v37, %v322_v40  ;;  %v2314_v51 = vadd.f32 %v401_v29, %v323_v22  ;;  %v552_v40 = vadd.f32 %v551_v9, %v2257_v58 }
  0xa5   : > { %v405_v8 = vld [vmem:[%s1998_s20 + $0x148] sm:$0xff]  ;;  %v2316_v26 = vadd.f32 %v402_v41, %v324_v25  ;;  %v340_v44 = vld [vmem:[%s1990_s7 + $0x1b0] sm:$0xff]  ;;  %v341_v2 = vld [vmem:[%s1990_s7 + $0x1b8] sm:$0xff]  ;;  %v571_v22 = vadd.f32 %v570_v27, %v2288_v38  ;;  %v2330_v25 = vadd.f32 %v403_v47, %v325_v62  ;;  %v2337_v41 = vadd.f32 %v404_v60, %v326_v56 }
  0xa6   : > { %3610 = vst [vmem:[#allocation58_spill] sm:$0xff] %v2312_v63  ;;  %3611 = vst [vmem:[#allocation59_spill] sm:$0xff] %v2314_v51  ;;  %v342_v15 = vld [vmem:[%s1990_s7 + $0x1c0] sm:$0xff]  ;;  %v562_v37 = vadd.f32 %v2314_v51, %v2312_v63  ;;  %v343_v59 = vld [vmem:[%s1990_s7 + $0x1c8] sm:$0xff]  ;;  %v2339_v53 = vadd.f32 %v405_v8, %v327_v43  ;;  %v2346_v62 = vmul.f32 %v2255_v54, %v2255_v54  ;;  %553 = vadd.xlane.f32.xlu0 %v552_v40 }
  0xa7   : > { %3612 = vst [vmem:[#allocation60_spill] sm:$0xff] %v2316_v26  ;;  %3613 = vst [vmem:[#allocation61_spill] sm:$0xff] %v2330_v25  ;;  %v344_v61 = vld [vmem:[%s1990_s7 + $0x1d0] sm:$0xff]  ;;  %v345_v29 = vld [vmem:[%s1990_s7 + $0x1d8] sm:$0xff]  ;;  %v731_v47 = vadd.f32 %v650_v57, %v649_v0  ;;  %v572_v45 = vadd.f32 %v571_v22, %v2295_v31  ;;  %v712_v40 = vadd.f32 %v711_v30, %v2240_v39 }
  0xa8   : > { %3614 = vst [vmem:[#allocation62_spill] sm:$0xff] %v2337_v41  ;;  %v418_v9 = vld [vmem:[%s1998_s20 + $0x1b0] sm:$0xff]  ;;  %v419_v27 = vld [vmem:[%s1998_s20 + $0x1b8] sm:$0xff]  ;;  %v420_v6 = vld [vmem:[%s1998_s20 + $0x1c0] sm:$0xff]  ;;  %v563_v36 = vadd.f32 %v562_v37, %v2316_v26  ;;  %v2365_v22 = vmul.f32 %v2257_v58, %v2257_v58 }
  0xa9   : > { %v421_v56 = vld [vmem:[%s1998_s20 + $0x1c8] sm:$0xff]  ;;  %v422_v60 = vld [vmem:[%s1998_s20 + $0x1d0] sm:$0xff]  ;;  %v423_v43 = vld [vmem:[%s1998_s20 + $0x1d8] sm:$0xff]  ;;  %v2353_v8 = vadd.f32 %v418_v9, %v340_v44  ;;  %v2355_v35 = vadd.f32 %v419_v27, %v341_v2  ;;  %v2357_v34 = vadd.f32 %v420_v6, %v342_v15  ;;  %v2369_v44 = vmul.f32 %v2123_v10, %v2123_v10 }
  0xaa   : > { %v334_v54 = vld [vmem:[%s1990_s7 + $0x180] sm:$0xff]  ;;  %v335_v0 = vld [vmem:[%s1990_s7 + $0x188] sm:$0xff]  ;;  %v336_v57 = vld [vmem:[%s1990_s7 + $0x190] sm:$0xff]  ;;  %v573_v2 = vadd.f32 %v572_v45, %v2297_v28  ;;  %v564_v6 = vadd.f32 %v563_v36, %v2330_v25  ;;  %v2373_v15 = vadd.f32 %v421_v56, %v343_v59  ;;  %v2380_v27 = vadd.f32 %v422_v60, %v344_v61 }
  0xab   : > { %3615 = vst [vmem:[#allocation63_spill] sm:$0xff] %v2353_v8  ;;  %3616 = vst [vmem:[#allocation64_spill] sm:$0xff] %v2355_v35  ;;  %v583_v37 = vadd.f32 %v2355_v35, %v2353_v8  ;;  %v337_v39 = vld [vmem:[%s1990_s7 + $0x198] sm:$0xff]  ;;  %v338_v30 = vld [vmem:[%s1990_s7 + $0x1a0] sm:$0xff]  ;;  %v2382_v58 = vadd.f32 %v423_v43, %v345_v29  ;;  %v732_v59 = vadd.f32 %v731_v47, %v651_v11 }
  0xac   : > { %3617 = vst [vmem:[#allocation65_spill] sm:$0xff] %v2357_v34  ;;  %3618 = vst [vmem:[#allocation66_spill] sm:$0xff] %v2373_v15  ;;  %v339_v9 = vld [vmem:[%s1990_s7 + $0x1a8] sm:$0xff]  ;;  %v412_v45 = vld [vmem:[%s1998_s20 + $0x180] sm:$0xff]  ;;  %v2389_v56 = vmul.f32 %v2130_v19, %v2130_v19  ;;  %574 = vadd.xlane.f32.xlu1 %v573_v2  ;;  %v565_v24 = vadd.f32 %v564_v6, %v2337_v41  ;;  %v2408_v19 = vmul.f32 %v2132_v20, %v2132_v20 }
  0xad   : > { %3619 = vst [vmem:[#allocation67_spill] sm:$0xff] %v2380_v27  ;;  %3620 = vst [vmem:[#allocation68_spill] sm:$0xff] %v2382_v58  ;;  %v413_v36 = vld [vmem:[%s1998_s20 + $0x188] sm:$0xff]  ;;  %v414_v10 = vld [vmem:[%s1998_s20 + $0x190] sm:$0xff]  ;;  %v584_v23 = vadd.f32 %v583_v37, %v2357_v34  ;;  %v2396_v43 = vadd.f32 %v412_v45, %v334_v54  ;;  %v713_v37 = vadd.f32 %v712_v40, %v2244_v21 }
  0xae   : > { %v415_v61 = vld [vmem:[%s1998_s20 + $0x198] sm:$0xff]  ;;  %v416_v60 = vld [vmem:[%s1998_s20 + $0x1a0] sm:$0xff]  ;;  %v417_v29 = vld [vmem:[%s1998_s20 + $0x1a8] sm:$0xff]  ;;  %v2398_v18 = vadd.f32 %v413_v36, %v335_v0  ;;  %v2400_v11 = vadd.f32 %v414_v10, %v336_v57  ;;  %v724_v54 = vadd.f32 %v2161_v50, %v2157_v49  ;;  %v566_v0 = vadd.f32 %v565_v24, %v2339_v53 }
  0xaf   : > { %v352_v47 = vld [vmem:[%s1990_s7 + $0x210] sm:$0xff]  ;;  %v353_v2 = vld [vmem:[%s1990_s7 + $0x218] sm:$0xff]  ;;  %v354_v6 = vld [vmem:[%s1990_s7 + $0x220] sm:$0xff]  ;;  %v585_v10 = vadd.f32 %v584_v23, %v2373_v15  ;;  %v2414_v57 = vadd.f32 %v415_v61, %v337_v39  ;;  %v2421_v20 = vadd.f32 %v416_v60, %v338_v30  ;;  %v2423_v14 = vadd.f32 %v417_v29, %v339_v9 }
  0xb0   : > { %v576_v45 = vadd.f32 %v2398_v18, %v2396_v43  ;;  %v355_v21 = vld [vmem:[%s1990_s7 + $0x228] sm:$0xff]  ;;  %v356_v40 = vld [vmem:[%s1990_s7 + $0x230] sm:$0xff]  ;;  %v357_v36 = vld [vmem:[%s1990_s7 + $0x238] sm:$0xff]  ;;  %v733_v50 = vadd.f32 %v732_v59, %v2326_v46  ;;  %v661_v39 = vmul.f32 %v2312_v63, %v2312_v63  ;;  %567 = vadd.xlane.f32.xlu0 %v566_v0  ;;  %v662_v63 = vmul.f32 %v2314_v51, %v2314_v51 }
  0xb1   : > { %v430_v24 = vld [vmem:[%s1998_s20 + $0x210] sm:$0xff]  ;;  %v431_v49 = vld [vmem:[%s1998_s20 + $0x218] sm:$0xff]  ;;  %v432_v23 = vld [vmem:[%s1998_s20 + $0x220] sm:$0xff]  ;;  %v586_v61 = vadd.f32 %v585_v10, %v2380_v27  ;;  %v2445_v10 = vadd.f32 %v713_v37, %v2265_v4 }
  0xb2   : > { %v577_v13 = vadd.f32 %v576_v45, %v2400_v11  ;;  %v433_v30 = vld [vmem:[%s1998_s20 + $0x228] sm:$0xff]  ;;  %v434_v60 = vld [vmem:[%s1998_s20 + $0x230] sm:$0xff]  ;;  %v435_v9 = vld [vmem:[%s1998_s20 + $0x238] sm:$0xff]  ;;  %v2436_v29 = vadd.f32 %v430_v24, %v352_v47  ;;  %v2438_v12 = vadd.f32 %v431_v49, %v353_v2  ;;  %v2440_v46 = vadd.f32 %v432_v23, %v354_v6 }
  0xb3   : > { %v346_v59 = vld [vmem:[%s1990_s7 + $0x1e0] sm:$0xff]  ;;  %v347_v0 = vld [vmem:[%s1990_s7 + $0x1e8] sm:$0xff]  ;;  %3624 = vst [vmem:[#allocation72_spill] sm:$0xff] %v2445_v10  ;;  %v725_v45 = vadd.f32 %v724_v54, %v2181_v3  ;;  %v587_v47 = vadd.f32 %v586_v61, %v2382_v58  ;;  %v2452_v24 = vadd.f32 %v433_v30, %v355_v21  ;;  %v348_v49 = vld [vmem:[%s1990_s7 + $0x1f0] sm:$0xff]  ;;  %v2459_v3 = vadd.f32 %v434_v60, %v356_v40 }
  0xb4   : > { %3621 = vst [vmem:[#allocation69_spill] sm:$0xff] %v2436_v29  ;;  %3622 = vst [vmem:[#allocation70_spill] sm:$0xff] %v2438_v12  ;;  %v578_v2 = vadd.f32 %v577_v13, %v2414_v57  ;;  %v597_v6 = vadd.f32 %v2438_v12, %v2436_v29  ;;  %v349_v4 = vld [vmem:[%s1990_s7 + $0x1f8] sm:$0xff]  ;;  %v350_v37 = vld [vmem:[%s1990_s7 + $0x200] sm:$0xff]  ;;  %v2461_v54 = vadd.f32 %v435_v9, %v357_v36 }
  0xb5   : > { %3623 = vst [vmem:[#allocation71_spill] sm:$0xff] %v2440_v46  ;;  %3625 = vst [vmem:[#allocation73_spill] sm:$0xff] %v2452_v24  ;;  %v424_v23 = vld [vmem:[%s1998_s20 + $0x1e0] sm:$0xff]  ;;  %v425_v13 = vld [vmem:[%s1998_s20 + $0x1e8] sm:$0xff]  ;;  %v2467_v61 = vadd.f32 %v733_v50, %v2346_v62  ;;  %v663_v30 = vmul.f32 %v2316_v26, %v2316_v26  ;;  %588 = vadd.xlane.f32.xlu1 %v587_v47  ;;  %v664_v26 = vmul.f32 %v2330_v25, %v2330_v25 }
  0xb6   : > { %3626 = vst [vmem:[#allocation74_spill] sm:$0xff] %v2459_v3  ;;  %3627 = vst [vmem:[#allocation75_spill] sm:$0xff] %v2461_v54  ;;  %v426_v21 = vld [vmem:[%s1998_s20 + $0x1f0] sm:$0xff]  ;;  %v579_v51 = vadd.f32 %v578_v2, %v2421_v20  ;;  %v598_v40 = vadd.f32 %v597_v6, %v2440_v46  ;;  %v351_v60 = vld [vmem:[%s1990_s7 + $0x208] sm:$0xff]  ;;  %v2477_v12 = vadd.f32 %v424_v23, %v346_v59 }
  0xb7   : > { %v427_v36 = vld [vmem:[%s1998_s20 + $0x1f8] sm:$0xff]  ;;  %v428_v9 = vld [vmem:[%s1998_s20 + $0x200] sm:$0xff]  ;;  %v429_v58 = vld [vmem:[%s1998_s20 + $0x208] sm:$0xff]  ;;  %v2479_v29 = vadd.f32 %v425_v13, %v347_v0  ;;  %v2481_v62 = vadd.f32 %v426_v21, %v348_v49  ;;  %v726_v6 = vadd.f32 %v725_v45, %v2369_v44  ;;  %v665_v46 = vmul.f32 %v2337_v41, %v2337_v41 }
  0xb8   : > { %3628 = vst [vmem:[#allocation76_spill] sm:$0xff] %v2477_v12  ;;  %v358_v50 = vld [vmem:[%s1990_s7 + $0x240] sm:$0xff]  ;;  %v359_v47 = vld [vmem:[%s1990_s7 + $0x248] sm:$0xff]  ;;  %v360_v2 = vld [vmem:[%s1990_s7 + $0x250] sm:$0xff]  ;;  %v580_v59 = vadd.f32 %v579_v51, %v2423_v14  ;;  %v599_v0 = vadd.f32 %v598_v40, %v2452_v24  ;;  %v2493_v49 = vadd.f32 %v427_v36, %v349_v4  ;;  %v2500_v21 = vadd.f32 %v428_v9, %v350_v37 }
  0xb9   : > { %3629 = vst [vmem:[#allocation77_spill] sm:$0xff] %v2479_v29  ;;  %3630 = vst [vmem:[#allocation78_spill] sm:$0xff] %v2481_v62  ;;  %v590_v23 = vadd.f32 %v2479_v29, %v2477_v12  ;;  %v361_v13 = vld [vmem:[%s1990_s7 + $0x258] sm:$0xff]  ;;  %v362_v44 = vld [vmem:[%s1990_s7 + $0x260] sm:$0xff]  ;;  %v745_v15 = vadd.f32 %v662_v63, %v661_v39  ;;  %v655_v51 = vmul.f32 %v2188_v16, %v2188_v16 }
  0xba   : > { %3631 = vst [vmem:[#allocation79_spill] sm:$0xff] %v2493_v49  ;;  %v363_v45 = vld [vmem:[%s1990_s7 + $0x268] sm:$0xff]  ;;  %3632 = vst [vmem:[#allocation80_spill] sm:$0xff] %v2500_v21  ;;  %v436_v25 = vld [vmem:[%s1998_s20 + $0x240] sm:$0xff]  ;;  %v656_v4 = vmul.f32 %v2190_v17, %v2190_v17  ;;  %581 = vadd.xlane.f32.xlu0 %v580_v59  ;;  %v600_v40 = vadd.f32 %v599_v0, %v2459_v3  ;;  %v2518_v28 = vadd.f32 %v429_v58, %v351_v60 }
  0xbb   : > { %v437_v27 = vld [vmem:[%s1998_s20 + $0x248] sm:$0xff]  ;;  %v438_v41 = vld [vmem:[%s1998_s20 + $0x250] sm:$0xff]  ;;  %v591_v36 = vadd.f32 %v590_v23, %v2481_v62  ;;  %v439_v24 = vld [vmem:[%s1998_s20 + $0x258] sm:$0xff]  ;;  %v2514_v37 = vadd.f32 %v436_v25, %v358_v50  ;;  %v727_v39 = vadd.f32 %v726_v6, %v2389_v56  ;;  %v666_v59 = vmul.f32 %v2339_v53, %v2339_v53 }
  0xbc   : > { %v440_v10 = vld [vmem:[%s1998_s20 + $0x260] sm:$0xff]  ;;  %v441_v34 = vld [vmem:[%s1998_s20 + $0x268] sm:$0xff]  ;;  %v2516_v9 = vadd.f32 %v437_v27, %v359_v47  ;;  %3635 = vst [vmem:[#allocation83_spill] sm:$0xff] %v2518_v28  ;;  %v2520_v63 = vadd.f32 %v438_v41, %v360_v2  ;;  %v601_v0 = vadd.f32 %v600_v40, %v2461_v54  ;;  %v2527_v17 = vadd.f32 %v439_v24, %v361_v13 }
  0xbd   : > { %3633 = vst [vmem:[#allocation81_spill] sm:$0xff] %v2514_v37  ;;  %v592_v23 = vadd.f32 %v591_v36, %v2493_v49  ;;  %v2531_v27 = vadd.f32 %v440_v10, %v362_v44  ;;  %v2533_v58 = vadd.f32 %v441_v34, %v363_v45  ;;  %v746_v41 = vadd.f32 %v745_v15, %v663_v30  ;;  %v3687_v16 = vld [vmem:[#allocation60_spill] sm:$0xff] }
  0xbe   : > { %3634 = vst [vmem:[#allocation82_spill] sm:$0xff] %v2516_v9  ;;  %3636 = vst [vmem:[#allocation84_spill] sm:$0xff] %v2520_v63  ;;  %v604_v25 = vadd.f32 %v2516_v9, %v2514_v37  ;;  %v657_v56 = vmul.f32 %v2192_v5, %v2192_v5  ;;  %602 = vadd.xlane.f32.xlu1 %v601_v0  ;;  %v658_v24 = vmul.f32 %v2204_v32, %v2204_v32 }
  0xbf   : > { %3637 = vst [vmem:[#allocation85_spill] sm:$0xff] %v2527_v17  ;;  %3638 = vst [vmem:[#allocation86_spill] sm:$0xff] %v2531_v27  ;;  %v593_v60 = vadd.f32 %v592_v23, %v2500_v21  ;;  %v738_v47 = vadd.f32 %v656_v4, %v655_v51  ;;  %v747_v2 = vadd.f32 %v746_v41, %v664_v26 }
  0xc0   : > { %3639 = vst [vmem:[#allocation87_spill] sm:$0xff] %v2533_v58  ;;  %v605_v50 = vadd.f32 %v604_v25, %v2520_v63  ;;  %v673_v10 = vmul.f32 %v2396_v43, %v2396_v43  ;;  %v674_v34 = vmul.f32 %v2398_v18, %v2398_v18  ;;  %v675_v15 = vmul.f32 %v2400_v11, %v2400_v11 }
  0xc1   : > { %v594_v30 = vadd.f32 %v593_v60, %v2518_v28  ;;  %v659_v13 = vmul.f32 %v2211_v48, %v2211_v48  ;;  %v739_v44 = vadd.f32 %v738_v47, %v657_v56  ;;  %v735_v26 = vadd.f32 %v2467_v61, %v2365_v22 }
  0xc2   : > { %v606_v6 = vadd.f32 %v605_v50, %v2527_v17  ;;  %v748_v45 = vadd.f32 %v747_v2, %v665_v46  ;;  %v676_v51 = vmul.f32 %v2414_v57, %v2414_v57  ;;  %v759_v4 = vadd.f32 %v674_v34, %v673_v10  ;;  %708 = vadd.xlane.f32.xlu1 %v2303_v42 }
  0xc3   : > { %595 = vadd.xlane.f32.xlu0 %v594_v30  ;;  %v740_v36 = vadd.f32 %v739_v44, %v658_v24  ;;  %v667_v0 = vmul.f32 %v2272_v33, %v2272_v33  ;;  %v677_v23 = vmul.f32 %v2421_v20, %v2421_v20  ;;  %v668_v22 = vmul.f32 %v2274_v1, %v2274_v1 }
  0xc4   : > { %v607_v40 = vadd.f32 %v606_v6, %v2531_v27  ;;  %v760_v25 = vadd.f32 %v759_v4, %v675_v15  ;;  %v669_v46 = vmul.f32 %v2276_v7, %v2276_v7  ;;  %v728_v42 = vadd.f32 %v727_v39, %v2408_v19  ;;  %v3640_v4 = vld [vmem:[#allocation57_spill] sm:$0xff] }
  0xc5   : > { %v660_v41 = vmul.f32 %v2213_v52, %v2213_v52  ;;  %v741_v56 = vadd.f32 %v740_v36, %v659_v13  ;;  %v670_v50 = vmul.f32 %v2288_v38, %v2288_v38  ;;  %v752_v24 = vadd.f32 %v668_v22, %v667_v0  ;;  %v3642_v0 = vld [vmem:[#allocation72_spill] sm:$0xff] }
  0xc6   : > { %v608_v61 = vadd.f32 %v607_v40, %v2533_v58  ;;  %v761_v60 = vadd.f32 %v760_v25, %v676_v51  ;;  %v685_v47 = vmul.f32 %v2477_v12, %v2477_v12  ;;  %722 = vadd.xlane.f32.xlu1 %v2282_v55  ;;  %v678_v2 = vmul.f32 %v2423_v14, %v2423_v14  ;;  %v3652_v12 = vld [vmem:[#allocation18_spill] sm:$0xff] }
  0xc7   : > { %v686_v19 = vmul.f32 %v2479_v29, %v2479_v29  ;;  %v687_v39 = vmul.f32 %v2481_v62, %v2481_v62  ;;  %v749_v10 = vadd.f32 %v748_v45, %v666_v59  ;;  %v671_v15 = vmul.f32 %v2295_v31, %v2295_v31  ;;  %v3641_v45 = vld [vmem:[#allocation65_spill] sm:$0xff]  ;;  %v3657_v29 = vld [vmem:[#allocation22_spill] sm:$0xff] }
  0xc8   : > { %609 = vadd.xlane.f32.xlu0 %v608_v61  ;;  %v762_v34 = vadd.f32 %v761_v60, %v677_v23  ;;  %v753_v30 = vadd.f32 %v752_v24, %v669_v46  ;;  %v688_v6 = vmul.f32 %v2493_v49, %v2493_v49  ;;  %v679_v55 = vmul.f32 %v2353_v8, %v2353_v8  ;;  %v3643_v46 = vld [vmem:[#allocation66_spill] sm:$0xff]  ;;  %v3651_v62 = vld [vmem:[#allocation17_spill] sm:$0xff] }
  0xc9   : > { %v773_v13 = vadd.f32 %v686_v19, %v685_v47  ;;  %v680_v44 = vmul.f32 %v2355_v35, %v2355_v35  ;;  %v742_v51 = vadd.f32 %v741_v56, %v660_v41  ;;  %v672_v40 = vmul.f32 %v3640_v4, %v3640_v4 }
  0xca   : > { %v754_v59 = vadd.f32 %v753_v30, %v670_v50  ;;  %v681_v36 = vmul.f32 %v3641_v45, %v3641_v45  ;;  %736 = vadd.xlane.f32.xlu1 %v735_v26  ;;  %v689_v23 = vmul.f32 %v2500_v21, %v2500_v21  ;;  %v690_v25 = vmul.f32 %v2518_v28, %v2518_v28  ;;  %v3644_v26 = vld [vmem:[#allocation67_spill] sm:$0xff] }
  0xcb   : > { %v774_v22 = vadd.f32 %v773_v13, %v687_v39  ;;  %v682_v61 = vmul.f32 %v3643_v46, %v3643_v46  ;;  %v766_v41 = vadd.f32 %v680_v44, %v679_v55  ;;  %v697_v56 = vmul.f32 %v2514_v37, %v2514_v37  ;;  %v3673_v46 = vld [vmem:[#allocation37_spill] sm:$0xff] }
  0xcc   : > { %715 = vadd.xlane.f32.xlu0 %v3642_v0  ;;  %v698_v60 = vmul.f32 %v2516_v9, %v2516_v9  ;;  %v763_v50 = vadd.f32 %v762_v34, %v678_v2  ;;  %v683_v47 = vmul.f32 %v3644_v26, %v3644_v26  ;;  %v699_v19 = vmul.f32 %v2520_v63, %v2520_v63  ;;  %v3645_v0 = vld [vmem:[#allocation69_spill] sm:$0xff]  ;;  %v3646_v2 = vld [vmem:[#allocation70_spill] sm:$0xff]  ;;  %v3662_v26 = vld [vmem:[#allocation27_spill] sm:$0xff] }
  0xcd   : > { %v775_v24 = vadd.f32 %v774_v22, %v688_v6  ;;  %v755_v30 = vadd.f32 %v754_v59, %v671_v15  ;;  %v767_v39 = vadd.f32 %v766_v41, %v681_v36  ;;  %v700_v13 = vmul.f32 %v2527_v17, %v2527_v17  ;;  %v3647_v15 = vld [vmem:[#allocation71_spill] sm:$0xff]  ;;  %v3648_v36 = vld [vmem:[#allocation68_spill] sm:$0xff] }
  0xce   : > { %v787_v55 = vadd.f32 %v698_v60, %v697_v56  ;;  %750 = vadd.xlane.f32.xlu1 %v749_v10  ;;  %v691_v9 = vmul.f32 %v3645_v0, %v3645_v0  ;;  %v692_v34 = vmul.f32 %v3646_v2, %v3646_v2  ;;  %v701_v22 = vmul.f32 %v2531_v27, %v2531_v27  ;;  %v3670_v2 = vld [vmem:[#allocation34_spill] sm:$0xff] }
  0xcf   : > { %v776_v44 = vadd.f32 %v775_v24, %v689_v23  ;;  %v768_v6 = vadd.f32 %v767_v39, %v682_v61  ;;  %v693_v59 = vmul.f32 %v3647_v15, %v3647_v15  ;;  %v684_v41 = vmul.f32 %v3648_v36, %v3648_v36  ;;  %v3659_v15 = vld [vmem:[#allocation24_spill] sm:$0xff]  ;;  %v3661_v36 = vld [vmem:[#allocation26_spill] sm:$0xff] }
  0xd0   : > { %729 = vadd.xlane.f32.xlu0 %v728_v42  ;;  %v788_v63 = vadd.f32 %v787_v55, %v699_v19  ;;  %v3649_v42 = vld [vmem:[#allocation73_spill] sm:$0xff]  ;;  %v780_v23 = vadd.f32 %v692_v34, %v691_v9  ;;  %v756_v56 = vadd.f32 %v755_v30, %v672_v40  ;;  %v702_v24 = vmul.f32 %v2533_v58, %v2533_v58 }
  0xd1   : > { %v694_v10 = vmul.f32 %v3649_v42, %v3649_v42  ;;  %v777_v60 = vadd.f32 %v776_v44, %v690_v25  ;;  %v769_v39 = vadd.f32 %v768_v6, %v683_v47  ;;  %v695_v19 = vmul.f32 %v2459_v3, %v2459_v3 }
  0xd2   : > { %v789_v61 = vadd.f32 %v788_v63, %v700_v13  ;;  %764 = vadd.xlane.f32.xlu1 %v763_v50  ;;  %v781_v55 = vadd.f32 %v780_v23, %v693_v59  ;;  %v696_v37 = vmul.f32 %v2461_v54, %v2461_v54  ;;  %v952_v44 = vlaneseq }
  0xd3   : > { %v770_v9 = vadd.f32 %v769_v39, %v684_v41  ;;  %v950_v41 = vld [vmem:[#allocation7] sm:$0x3f] }
  0xd4   : > { %743 = vadd.xlane.f32.xlu0 %v742_v51  ;;  %v790_v27 = vadd.f32 %v789_v61, %v701_v22  ;;  %v782_v17 = vadd.f32 %v781_v55, %v694_v10  ;;  %v953_v22 = vshrl.u32 %v952_v44, 7 }
  0xd6   : > { %778 = vadd.xlane.f32.xlu1 %v777_v60  ;;  %v791_v40 = vadd.f32 %v790_v27, %v702_v24  ;;  %v783_v25 = vadd.f32 %v782_v17, %v695_v19  ;;  %v954_v10 = vsub.s32 0, %v953_v22  ;;  %v958_v27 = vsub.s32 1, %v953_v22  ;;  %v1138_v24 = vld [vmem:[#allocation8] sm:$0x3f] }
  0xd7   : > { %v962_v17 = vsub.s32 2, %v953_v22  ;;  %v966_v23 = vsub.s32 3, %v953_v22  ;;  %v974_v60 = vsub.s32 5, %v953_v22 }
  0xd8   : > { %757 = vadd.xlane.f32.xlu0 %v756_v56  ;;  %v784_v63 = vadd.f32 %v783_v25, %v696_v37  ;;  %v970_v37 = vsub.s32 4, %v953_v22  ;;  %v2635_v39 = vrot.slane %v950_v41, %v954_v10  ;;  %v2637_v19 = vrot.slane %v950_v41, %v958_v27 }
  0xd9   : > { %v2639_v55 = vrot.slane %v950_v41, %v962_v17  ;;  %v2651_v22 = vrot.slane %v950_v41, %v974_v60  ;;  %v2655_v58 = vrot.slane %v1138_v24, %v962_v17  ;;  %v2657_v28 = vrot.slane %v1138_v24, %v966_v23  ;;  %v3654_v17 = vld [vmem:[#allocation19_spill] sm:$0xff] }
  0xda   : > { %792 = vadd.xlane.f32.xlu1 %v791_v40  ;;  %v2643_v40 = vrot.slane %v1138_v24, %v954_v10  ;;  %v2649_v44 = vrot.slane %v950_v41, %v970_v37  ;;  %v2659_v21 = vrot.slane %v1138_v24, %v970_v37  ;;  %v2661_v49 = vrot.slane %v1138_v24, %v974_v60  ;;  %v3650_v10 = vld [vmem:[#allocation16_spill] sm:$0xff] }
  0xdb   : > { %v3655_v37 = vld [vmem:[#allocation20_spill] sm:$0xff] }
  0xdc   : > { %771 = vadd.xlane.f32.xlu0 %v770_v9  ;;  %v2641_v9 = vrot.slane %v950_v41, %v966_v23  ;;  %v3660_v23 = vld [vmem:[#allocation25_spill] sm:$0xff] }
  0xe0   : > { %785 = vadd.xlane.f32.xlu0 %v784_v63 }
 0x117   : > { %v540_v51 = vpop.xlane.xlu1 %539 }
 0x118   : > { %v2633_v61 = vmul.f32 0.0013020834, %v540_v51  ;;  %v2653_v51 = vrot.slane %v1138_v24, %v958_v27 }
 0x11b   : > { %v526_v50 = vpop.xlane.xlu0 %525 }
 0x11c   : > { %v2645_v25 = vmul.f32 0.0013020834, %v526_v50  ;;  %v809_v50 = vmul.f32 %v2633_v61, %v2633_v61 }
 0x11e   : > { %v807_v42 = vmul.f32 %v2645_v25, %v2645_v25 }
 0x120   : > { %v547_v47 = vpop.xlane.xlu1 %546 }
 0x121   : > { %v2669_v54 = vmul.f32 0.0013020834, %v547_v47  ;;  %v3658_v47 = vld [vmem:[#allocation23_spill] sm:$0xff] }
 0x123   : > { %3653 = vst [vmem:[#allocation72_spill] sm:$0xff] %v2669_v54  ;;  %v2721_v24 = vmul.f32 %v2669_v54, %v2669_v54 }
 0x125   : > { %v533_v30 = vpop.xlane.xlu0 %532 }
 0x126   : > { %v2687_v0 = vmul.f32 0.0013020834, %v533_v30 }
 0x128   : > { %v808_v7 = vmul.f32 %v2687_v0, %v2687_v0 }
 0x12a   : > { %v561_v13 = vpop.xlane.xlu1 %560 }
 0x12b   : > { %v2703_v4 = vmul.f32 0.0013020834, %v561_v13 }
 0x12d   : > { %3666 = vst [vmem:[#allocation16_spill] sm:$0xff] %v2703_v4 }
 0x12f   : > { %v554_v34 = vpop.xlane.xlu0 %553 }
 0x130   : > { %v2729_v35 = vmul.f32 0.0013020834, %v554_v34 }
 0x132   : > { %v811_v1 = vmul.f32 %v2729_v35, %v2729_v35 }
 0x135   : > { %v2627_v6 = vpop.xlane.xlu1 %574 }
 0x139   : > { %v2629_v59 = vpop.xlane.xlu0 %567 }
 0x13e   : > { %v2631_v56 = vpop.xlane.xlu1 %588 }
 0x143   : > { %v2647_v63 = vpop.xlane.xlu0 %581 }
 0x144   : > { %v2783_v52 = vmul.f32 0.0013020834, %v2647_v63 }
 0x147   : > { %v2671_v27 = vpop.xlane.xlu1 %602 }
 0x14b   : > { %v709_v3 = vpop.xlane.xlu1 %708 }
 0x14c   : > { %v2705_v60 = vpop.xlane.xlu0 %595  ;;  %v794_v33 = vmul.f32 0.0013020834, %v709_v3 }
 0x14e   : > { %v820_v30 = vsub.f32 %v794_v33, %v807_v42  ;;  %v2748_v33 = vmul.f32 0.0013020834, %v2627_v6  ;;  %v2751_v42 = vmul.f32 0.0013020834, %v2629_v59 }
 0x14f   : > { %v723_v8 = vpop.xlane.xlu1 %722 }
 0x150   : > { %v796_v13 = vmul.f32 0.0013020834, %v723_v8  ;;  %3677 = vst [vmem:[#allocation17_spill] sm:$0xff] %v2748_v33  ;;  %v833_v45 = vmax.f32 %v820_v30, 0.0  ;;  %v812_v8 = vmul.f32 %v2703_v4, %v2703_v4  ;;  %v2773_v59 = vmul.f32 %v2748_v33, %v2748_v33 }
 0x151   : > { %v2735_v54 = vpop.xlane.xlu0 %609  ;;  %v813_v33 = vmul.f32 %v2751_v42, %v2751_v42 }
 0x152   : > { %v846_v48 = vadd.f32 1e-05, %v833_v45  ;;  %v822_v30 = vsub.f32 %v796_v13, %v809_v50  ;;  %v2778_v13 = vmul.f32 0.0013020834, %v2631_v56  ;;  %v3688_v56 = vld [vmem:[#allocation61_spill] sm:$0xff] }
 0x153   : > { %v737_v38 = vpop.xlane.xlu1 %736 }
 0x154   : > { %v798_v5 = vmul.f32 0.0013020834, %v737_v38  ;;  %1554 = vrsqrt.f32 %v846_v48  ;;  %v835_v6 = vmax.f32 %v822_v30, 0.0  ;;  %3686 = vst [vmem:[#allocation18_spill] sm:$0xff] %v2778_v13 }
 0x155   : > { %v716_v3 = vpop.xlane.xlu0 %715 }
 0x156   : > { %v795_v34 = vmul.f32 0.0013020834, %v716_v3  ;;  %v824_v38 = vsub.f32 %v798_v5, %v811_v1  ;;  %v848_v48 = vadd.f32 1e-05, %v835_v6  ;;  %v3689_v1 = vld [vmem:[#allocation62_spill] sm:$0xff] }
 0x157   : > { %v751_v32 = vpop.xlane.xlu1 %750 }
 0x158   : > { %v821_v3 = vsub.f32 %v795_v34, %v808_v7  ;;  %v837_v31 = vmax.f32 %v824_v38, 0.0  ;;  %v800_v45 = vmul.f32 0.0013020834, %v751_v32  ;;  %1556 = vrsqrt.f32 %v848_v48 }
 0x159   : > { %v730_v30 = vpop.xlane.xlu0 %729  ;;  %v815_v38 = vmul.f32 %v2783_v52, %v2783_v52 }
 0x15a   : > { %v834_v4 = vmax.f32 %v821_v3, 0.0  ;;  %v797_v50 = vmul.f32 0.0013020834, %v730_v30  ;;  %v826_v41 = vsub.f32 %v800_v45, %v813_v33  ;;  %v2796_v3 = vmul.f32 %v2778_v13, %v2778_v13 }
 0x15b   : > { %v2803_v30 = vmul.f32 0.0013020834, %v2705_v60  ;;  %v850_v5 = vadd.f32 1e-05, %v837_v31  ;;  %v765_v48 = vpop.xlane.xlu1 %764 }
 0x15c   : > { %v847_v34 = vadd.f32 1e-05, %v834_v4  ;;  %v823_v6 = vsub.f32 %v797_v50, %v2721_v24  ;;  %3690 = vst [vmem:[#allocation19_spill] sm:$0xff] %v2796_v3  ;;  %v839_v24 = vmax.f32 %v826_v41, 0.0  ;;  %v2808_v50 = vmul.f32 0.0013020834, %v2671_v27 }
 0x15d   : > { %3691 = vst [vmem:[#allocation20_spill] sm:$0xff] %v2803_v30  ;;  %v744_v63 = vpop.xlane.xlu0 %743  ;;  %v802_v32 = vmul.f32 0.0013020834, %v765_v48  ;;  %v2822_v60 = vmul.f32 %v2803_v30, %v2803_v30  ;;  %v3696_v30 = vsub.f32 %v3660_v23, %v2645_v25 }
 0x15e   : > { %1558 = vrsqrt.f32 %v847_v34  ;;  %v836_v4 = vmax.f32 %v823_v6, 0.0  ;;  %v799_v33 = vmul.f32 0.0013020834, %v744_v63  ;;  %3692 = vst [vmem:[#allocation22_spill] sm:$0xff] %v2808_v50  ;;  %v852_v7 = vadd.f32 1e-05, %v839_v24 }
 0x15f   : > { %1560 = vrsqrt.f32 %v850_v5  ;;  %v828_v34 = vsub.f32 %v802_v32, %v815_v38  ;;  %v779_v6 = vpop.xlane.xlu1 %778  ;;  %v2829_v24 = vmul.f32 %v2808_v50, %v2808_v50  ;;  %v3695_v63 = vsub.f32 %v3659_v15, %v2645_v25 }
 0x160   : > { %v849_v31 = vadd.f32 1e-05, %v836_v4  ;;  %v825_v13 = vsub.f32 %v799_v33, %v812_v8  ;;  %v2818_v3 = vmul.f32 0.0013020834, %v779_v6  ;;  %v2825_v8 = vmul.f32 0.0013020834, %v2735_v54 }
 0x161   : > { %v758_v27 = vpop.xlane.xlu0 %757  ;;  %v841_v4 = vmax.f32 %v828_v34, 0.0  ;;  %v1555_v5 = vpop.eup %1554 }
 0x162   : > { %v838_v48 = vmax.f32 %v825_v13, 0.0  ;;  %v801_v45 = vmul.f32 0.0013020834, %v758_v27  ;;  %1562 = vrsqrt.f32 %v849_v31  ;;  %v982_v33 = vmul.f32 %v1555_v5, %v2635_v39 }
 0x163   : > { %1564 = vrsqrt.f32 %v852_v7  ;;  %v983_v27 = vmul.f32 %v1555_v5, %v2637_v19  ;;  %v984_v54 = vmul.f32 %v1555_v5, %v2639_v55  ;;  %v985_v31 = vmul.f32 %v1555_v5, %v2641_v9 }
 0x164   : > { %v851_v32 = vadd.f32 1e-05, %v838_v48  ;;  %v827_v13 = vsub.f32 %v801_v45, %v2773_v59  ;;  %v986_v34 = vmul.f32 %v1555_v5, %v2649_v44  ;;  %v987_v6 = vmul.f32 %v1555_v5, %v2651_v22 }
 0x165   : > { %v854_v7 = vadd.f32 1e-05, %v841_v4  ;;  %v3693_v59 = vsub.f32 %v3657_v29, %v2645_v25  ;;  %v3694_v48 = vsub.f32 %v3658_v47, %v2645_v25  ;;  %v1062_v41 = vmul.f32 %v984_v54, %v3695_v63  ;;  %v1557_v5 = vpop.eup %1556 }
 0x166   : > { %1566 = vrsqrt.f32 %v851_v32  ;;  %v1063_v50 = vmul.f32 %v985_v31, %v3696_v30  ;;  %v3697_v4 = vsub.f32 %v3661_v36, %v2645_v25  ;;  %v3698_v29 = vsub.f32 %v3662_v26, %v2645_v25 }
 0x167   : > { %v1060_v45 = vmul.f32 %v982_v33, %v3693_v59  ;;  %v1061_v38 = vmul.f32 %v983_v27, %v3694_v48  ;;  %1568 = vrsqrt.f32 %v854_v7  ;;  %v2858_v47 = vmax.f32 %v827_v13, 0.0 }
 0x168   : > { %v1064_v32 = vmul.f32 %v986_v34, %v3697_v4  ;;  %v1065_v33 = vmul.f32 %v987_v6, %v3698_v29  ;;  %v1172_v23 = vadd.f32 %v2655_v58, %v1062_v41  ;;  %v1173_v30 = vadd.f32 %v2657_v28, %v1063_v50 }
 0x169   : > { %v1170_v15 = vadd.f32 %v2643_v40, %v1060_v45  ;;  %v1171_v63 = vadd.f32 %v2653_v51, %v1061_v38  ;;  %v994_v54 = vmul.f32 %v1557_v5, %v2635_v39  ;;  %v995_v26 = vmul.f32 %v1557_v5, %v2637_v19 }
 0x16a   : > { %v1174_v27 = vadd.f32 %v2659_v21, %v1064_v32  ;;  %v1175_v36 = vadd.f32 %v2661_v49, %v1065_v33  ;;  %1250 = vst [vmem:[%s2869_s26 + $0x10] sm:$0xff] %v1172_v23  ;;  %1251 = vst [vmem:[%s2869_s26 + $0x18] sm:$0xff] %v1173_v30  ;;  %v996_v50 = vmul.f32 %v1557_v5, %v2639_v55 }
 0x16b   : > { %v1559_v25 = vpop.eup %1558  ;;  %1248 = vst [vmem:[%s2869_s26] sm:$0xff] %v1170_v15  ;;  %1249 = vst [vmem:[%s2869_s26 + $0x8] sm:$0xff] %v1171_v63  ;;  %v997_v41 = vmul.f32 %v1557_v5, %v2641_v9  ;;  %v998_v13 = vmul.f32 %v1557_v5, %v2649_v44  ;;  %v999_v38 = vmul.f32 %v1557_v5, %v2651_v22 }
 0x16c   : > { %1252 = vst [vmem:[%s2869_s26 + $0x20] sm:$0xff] %v1174_v27  ;;  %1253 = vst [vmem:[%s2869_s26 + $0x28] sm:$0xff] %v1175_v36  ;;  %v3699_v31 = vsub.f32 %v3650_v10, %v2633_v61  ;;  %v3700_v6 = vsub.f32 %v3651_v62, %v2633_v61  ;;  %v988_v59 = vmul.f32 %v1559_v25, %v2635_v39  ;;  %v3704_v62 = vld [vmem:[#allocation21_spill] sm:$0xff]  ;;  %v1561_v63 = vpop.eup %1560 }
 0x16d   : > { %v989_v45 = vmul.f32 %v1559_v25, %v2637_v19  ;;  %v3701_v48 = vsub.f32 %v3652_v12, %v2633_v61  ;;  %v3702_v4 = vsub.f32 %v3654_v17, %v2633_v61  ;;  %v3703_v10 = vsub.f32 %v3655_v37, %v2633_v61 }
 0x16e   : > { %v1072_v34 = vmul.f32 %v994_v54, %v3699_v31  ;;  %v1073_v7 = vmul.f32 %v995_v26, %v3700_v6  ;;  %v3705_v33 = vsub.f32 %v3704_v62, %v2633_v61  ;;  %v990_v30 = vmul.f32 %v1559_v25, %v2639_v55 }
 0x16f   : > { %v1074_v5 = vmul.f32 %v996_v50, %v3701_v48  ;;  %v1075_v32 = vmul.f32 %v997_v41, %v3702_v4  ;;  %v1076_v29 = vmul.f32 %v998_v13, %v3703_v10  ;;  %v991_v17 = vmul.f32 %v1559_v25, %v2641_v9  ;;  %v1563_v54 = vpop.eup %1562  ;;  %v3712_v4 = vld [vmem:[#allocation38_spill] sm:$0xff] }
 0x170   : > { %v1077_v15 = vmul.f32 %v999_v38, %v3705_v33  ;;  %v1182_v23 = vadd.f32 %v2643_v40, %v1072_v34  ;;  %v1183_v12 = vadd.f32 %v2653_v51, %v1073_v7  ;;  %v992_v26 = vmul.f32 %v1559_v25, %v2649_v44  ;;  %v3707_v38 = vld [vmem:[#allocation35_spill] sm:$0xff]  ;;  %v2919_v6 = vpop.eup %1564  ;;  %v3709_v7 = vld [vmem:[#allocation36_spill] sm:$0xff] }
 0x171   : > { %v1184_v37 = vadd.f32 %v2655_v58, %v1074_v5  ;;  %v1185_v27 = vadd.f32 %v2657_v28, %v1075_v32  ;;  %v1186_v61 = vadd.f32 %v2659_v21, %v1076_v29  ;;  %v993_v50 = vmul.f32 %v1559_v25, %v2651_v22  ;;  %v3714_v29 = vld [vmem:[#allocation39_spill] sm:$0xff] }
 0x172   : > { %v1187_v36 = vadd.f32 %v2661_v49, %v1077_v15  ;;  %1260 = vst [vmem:[%s2869_s26 + $0x60] sm:$0xff] %v1182_v23  ;;  %1261 = vst [vmem:[%s2869_s26 + $0x68] sm:$0xff] %v1183_v12  ;;  %v3706_v41 = vsub.f32 %v3670_v2, %v2687_v0  ;;  %v3708_v31 = vsub.f32 %v3707_v38, %v2687_v0  ;;  %v3718_v38 = vld [vmem:[#allocation47_spill] sm:$0xff] }
 0x173   : > { %1262 = vst [vmem:[%s2869_s26 + $0x70] sm:$0xff] %v1184_v37  ;;  %1263 = vst [vmem:[%s2869_s26 + $0x78] sm:$0xff] %v1185_v27  ;;  %v3710_v48 = vsub.f32 %v3709_v7, %v2687_v0  ;;  %v3711_v25 = vsub.f32 %v3673_v46, %v2687_v0  ;;  %v3713_v32 = vsub.f32 %v3712_v4, %v2687_v0  ;;  %v2941_v23 = vpop.eup %1566  ;;  %v3720_v7 = vld [vmem:[#allocation48_spill] sm:$0xff]  ;;  %v3724_v4 = vld [vmem:[#allocation50_spill] sm:$0xff] }
 0x174   : > { %v1066_v13 = vmul.f32 %v988_v59, %v3706_v41  ;;  %v1067_v34 = vmul.f32 %v989_v45, %v3708_v31  ;;  %1264 = vst [vmem:[%s2869_s26 + $0x80] sm:$0xff] %v1186_v61  ;;  %1265 = vst [vmem:[%s2869_s26 + $0x88] sm:$0xff] %v1187_v36  ;;  %v1006_v59 = vmul.f32 %v1561_v63, %v2635_v39 }
 0x175   : > { %v1068_v5 = vmul.f32 %v990_v30, %v3710_v48  ;;  %v1069_v2 = vmul.f32 %v991_v17, %v3711_v25  ;;  %v1007_v45 = vmul.f32 %v1561_v63, %v2637_v19  ;;  %v1070_v10 = vmul.f32 %v992_v26, %v3713_v32  ;;  %v2953_v26 = vpop.eup %1568  ;;  %v3722_v25 = vld [vmem:[#allocation49_spill] sm:$0xff] }
 0x176   : > { %v3715_v62 = vsub.f32 %v3714_v29, %v2687_v0  ;;  %v1176_v15 = vadd.f32 %v2643_v40, %v1066_v13  ;;  %v1177_v46 = vadd.f32 %v2653_v51, %v1067_v34  ;;  %v1008_v17 = vmul.f32 %v1561_v63, %v2639_v55 }
 0x177   : > { %v1178_v12 = vadd.f32 %v2655_v58, %v1068_v5  ;;  %v1179_v30 = vadd.f32 %v2657_v28, %v1069_v2  ;;  %v1009_v37 = vmul.f32 %v1561_v63, %v2641_v9  ;;  %v1180_v0 = vadd.f32 %v2659_v21, %v1070_v10  ;;  %v3726_v10 = vld [vmem:[#allocation51_spill] sm:$0xff] }
 0x178   : > { %v1071_v33 = vmul.f32 %v993_v50, %v3715_v62  ;;  %1254 = vst [vmem:[%s2869_s26 + $0x30] sm:$0xff] %v1176_v15  ;;  %1255 = vst [vmem:[%s2869_s26 + $0x38] sm:$0xff] %v1177_v46  ;;  %v1010_v61 = vmul.f32 %v1561_v63, %v2649_v44  ;;  %v1011_v36 = vmul.f32 %v1561_v63, %v2651_v22  ;;  %v3716_v50 = vld [vmem:[#allocation46_spill] sm:$0xff] }
 0x179   : > { %1256 = vst [vmem:[%s2869_s26 + $0x40] sm:$0xff] %v1178_v12  ;;  %1257 = vst [vmem:[%s2869_s26 + $0x48] sm:$0xff] %v1179_v30  ;;  %v3717_v41 = vsub.f32 %v3716_v50, %v2729_v35  ;;  %v3719_v31 = vsub.f32 %v3718_v38, %v2729_v35  ;;  %v3721_v48 = vsub.f32 %v3720_v7, %v2729_v35  ;;  %v3729_v50 = vld [vmem:[#allocation72_spill] sm:$0xff]  ;;  %v3731_v38 = vld [vmem:[#allocation29_spill] sm:$0xff] }
 0x17a   : > { %v1181_v27 = vadd.f32 %v2661_v49, %v1071_v33  ;;  %v3723_v2 = vsub.f32 %v3722_v25, %v2729_v35  ;;  %1258 = vst [vmem:[%s2869_s26 + $0x50] sm:$0xff] %v1180_v0  ;;  %v1000_v62 = vmul.f32 %v1563_v54, %v2635_v39  ;;  %v1001_v33 = vmul.f32 %v1563_v54, %v2637_v19  ;;  %v3733_v7 = vld [vmem:[#allocation30_spill] sm:$0xff]  ;;  %v3735_v25 = vld [vmem:[#allocation31_spill] sm:$0xff] }
 0x17b   : > { %v1084_v13 = vmul.f32 %v1006_v59, %v3717_v41  ;;  %v1085_v34 = vmul.f32 %v1007_v45, %v3719_v31  ;;  %v1086_v5 = vmul.f32 %v1008_v17, %v3721_v48  ;;  %v3725_v59 = vsub.f32 %v3724_v4, %v2729_v35 }
 0x17c   : > { %v1087_v63 = vmul.f32 %v1009_v37, %v3723_v2  ;;  %1259 = vst [vmem:[%s2869_s26 + $0x58] sm:$0xff] %v1181_v27  ;;  %v3727_v45 = vsub.f32 %v3726_v10, %v2729_v35  ;;  %v1002_v35 = vmul.f32 %v1563_v54, %v2639_v55  ;;  %v1003_v0 = vmul.f32 %v1563_v54, %v2641_v9 }
 0x17d   : > { %v1088_v32 = vmul.f32 %v1010_v61, %v3725_v59  ;;  %v1194_v15 = vadd.f32 %v2643_v40, %v1084_v13  ;;  %v1195_v46 = vadd.f32 %v2653_v51, %v1085_v34  ;;  %v1196_v12 = vadd.f32 %v2655_v58, %v1086_v5  ;;  %v3737_v59 = vld [vmem:[#allocation32_spill] sm:$0xff] }
 0x17e   : > { %v1089_v29 = vmul.f32 %v1011_v36, %v3727_v45  ;;  %v1197_v30 = vadd.f32 %v2657_v28, %v1087_v63  ;;  %v1004_v27 = vmul.f32 %v1563_v54, %v2649_v44  ;;  %v1005_v61 = vmul.f32 %v1563_v54, %v2651_v22  ;;  %v3728_v36 = vld [vmem:[#allocation28_spill] sm:$0xff]  ;;  %v3739_v45 = vld [vmem:[#allocation33_spill] sm:$0xff] }
 0x17f   : > { %v1198_v17 = vadd.f32 %v2659_v21, %v1088_v32  ;;  %1272 = vst [vmem:[%s2869_s26 + $0xc0] sm:$0xff] %v1194_v15  ;;  %1273 = vst [vmem:[%s2869_s26 + $0xc8] sm:$0xff] %v1195_v46  ;;  %v3730_v41 = vsub.f32 %v3728_v36, %v3729_v50  ;;  %v3732_v31 = vsub.f32 %v3731_v38, %v3729_v50 }
 0x180   : > { %v1199_v37 = vadd.f32 %v2661_v49, %v1089_v29  ;;  %1274 = vst [vmem:[%s2869_s26 + $0xd0] sm:$0xff] %v1196_v12  ;;  %1275 = vst [vmem:[%s2869_s26 + $0xd8] sm:$0xff] %v1197_v30  ;;  %v3734_v48 = vsub.f32 %v3733_v7, %v3729_v50  ;;  %v3736_v2 = vsub.f32 %v3735_v25, %v3729_v50 }
 0x181   : > { %v1078_v13 = vmul.f32 %v1000_v62, %v3730_v41  ;;  %v1079_v34 = vmul.f32 %v1001_v33, %v3732_v31  ;;  %1276 = vst [vmem:[%s2869_s26 + $0xe0] sm:$0xff] %v1198_v17  ;;  %v1018_v63 = vmul.f32 %v2919_v6, %v2635_v39  ;;  %v1019_v4 = vmul.f32 %v2919_v6, %v2637_v19  ;;  %v3743_v41 = vld [vmem:[#allocation59_spill] sm:$0xff] }
 0x182   : > { %1277 = vst [vmem:[%s2869_s26 + $0xe8] sm:$0xff] %v1199_v37  ;;  %v1080_v5 = vmul.f32 %v1002_v35, %v3734_v48  ;;  %v1081_v54 = vmul.f32 %v1003_v0, %v3736_v2  ;;  %v3738_v32 = vsub.f32 %v3737_v59, %v3729_v50  ;;  %v3740_v29 = vsub.f32 %v3739_v45, %v3729_v50 }
 0x183   : > { %v1188_v33 = vadd.f32 %v2643_v40, %v1078_v13  ;;  %v1189_v15 = vadd.f32 %v2653_v51, %v1079_v34  ;;  %v1020_v30 = vmul.f32 %v2919_v6, %v2639_v55  ;;  %v1021_v17 = vmul.f32 %v2919_v6, %v2641_v9 }
 0x184   : > { %v1082_v10 = vmul.f32 %v1004_v27, %v3738_v32  ;;  %v1083_v62 = vmul.f32 %v1005_v61, %v3740_v29  ;;  %v1190_v46 = vadd.f32 %v2655_v58, %v1080_v5  ;;  %v1191_v12 = vadd.f32 %v2657_v28, %v1081_v54  ;;  %v3741_v61 = vld [vmem:[#allocation58_spill] sm:$0xff]  ;;  %v3749_v29 = vld [vmem:[#allocation40_spill] sm:$0xff] }
 0x185   : > { %1266 = vst [vmem:[%s2869_s26 + $0x90] sm:$0xff] %v1188_v33  ;;  %1267 = vst [vmem:[%s2869_s26 + $0x98] sm:$0xff] %v1189_v15  ;;  %v1022_v0 = vmul.f32 %v2919_v6, %v2649_v44  ;;  %v1023_v27 = vmul.f32 %v2919_v6, %v2651_v22  ;;  %v3742_v36 = vsub.f32 %v3741_v61, %v2751_v42 }
 0x186   : > { %v1192_v37 = vadd.f32 %v2659_v21, %v1082_v10  ;;  %v1193_v35 = vadd.f32 %v2661_v49, %v1083_v62  ;;  %1268 = vst [vmem:[%s2869_s26 + $0xa0] sm:$0xff] %v1190_v46  ;;  %1269 = vst [vmem:[%s2869_s26 + $0xa8] sm:$0xff] %v1191_v12  ;;  %v3744_v13 = vsub.f32 %v3743_v41, %v2751_v42  ;;  %v3750_v62 = vld [vmem:[#allocation16_spill] sm:$0xff]  ;;  %v3752_v46 = vld [vmem:[#allocation41_spill] sm:$0xff] }
 0x187   : > { %v1096_v50 = vmul.f32 %v1018_v63, %v3742_v36  ;;  %v3745_v31 = vsub.f32 %v3687_v16, %v2751_v42  ;;  %v3746_v7 = vsub.f32 %v3688_v56, %v2751_v42  ;;  %v3747_v6 = vsub.f32 %v3689_v1, %v2751_v42  ;;  %v3758_v41 = vld [vmem:[#allocation44_spill] sm:$0xff] }
 0x188   : > { %v1097_v38 = vmul.f32 %v1019_v4, %v3744_v13  ;;  %1270 = vst [vmem:[%s2869_s26 + $0xb0] sm:$0xff] %v1192_v37  ;;  %1271 = vst [vmem:[%s2869_s26 + $0xb8] sm:$0xff] %v1193_v35  ;;  %v3748_v25 = vsub.f32 %v2339_v53, %v2751_v42  ;;  %v1012_v16 = vmul.f32 %v2941_v23, %v2635_v39  ;;  %v3754_v37 = vld [vmem:[#allocation42_spill] sm:$0xff] }
 0x189   : > { %v1098_v34 = vmul.f32 %v1020_v30, %v3745_v31  ;;  %v1099_v48 = vmul.f32 %v1021_v17, %v3746_v7  ;;  %v1100_v5 = vmul.f32 %v1022_v0, %v3747_v6  ;;  %v1013_v56 = vmul.f32 %v2941_v23, %v2637_v19  ;;  %v772_v17 = vpop.xlane.xlu0 %771  ;;  %v3760_v31 = vld [vmem:[#allocation45_spill] sm:$0xff] }
 0x18a   : > { %v1101_v2 = vmul.f32 %v1023_v27, %v3748_v25  ;;  %v1206_v54 = vadd.f32 %v2643_v40, %v1096_v50  ;;  %v1207_v63 = vadd.f32 %v2653_v51, %v1097_v38  ;;  %v1014_v42 = vmul.f32 %v2941_v23, %v2639_v55  ;;  %v3756_v27 = vld [vmem:[#allocation43_spill] sm:$0xff] }
 0x18b   : > { %v1208_v4 = vadd.f32 %v2655_v58, %v1098_v34  ;;  %v1209_v1 = vadd.f32 %v2657_v28, %v1099_v48  ;;  %v1210_v59 = vadd.f32 %v2659_v21, %v1100_v5  ;;  %v1015_v32 = vmul.f32 %v2941_v23, %v2641_v9 }
 0x18c   : > { %v1211_v53 = vadd.f32 %v2661_v49, %v1101_v2  ;;  %1284 = vst [vmem:[%s2869_s26 + $0x120] sm:$0xff] %v1206_v54  ;;  %1285 = vst [vmem:[%s2869_s26 + $0x128] sm:$0xff] %v1207_v63  ;;  %v1016_v10 = vmul.f32 %v2941_v23, %v2649_v44  ;;  %v1017_v45 = vmul.f32 %v2941_v23, %v2651_v22 }
 0x18d   : > { %1286 = vst [vmem:[%s2869_s26 + $0x130] sm:$0xff] %v1208_v4  ;;  %1287 = vst [vmem:[%s2869_s26 + $0x138] sm:$0xff] %v1209_v1  ;;  %v3751_v33 = vsub.f32 %v3749_v29, %v3750_v62  ;;  %v3753_v12 = vsub.f32 %v3752_v46, %v3750_v62  ;;  %v3755_v35 = vsub.f32 %v3754_v37, %v3750_v62  ;;  %v786_v46 = vpop.xlane.xlu0 %785 }
 0x18e   : > { %1288 = vst [vmem:[%s2869_s26 + $0x140] sm:$0xff] %v1210_v59  ;;  %1289 = vst [vmem:[%s2869_s26 + $0x148] sm:$0xff] %v1211_v53  ;;  %v3757_v23 = vsub.f32 %v3756_v27, %v3750_v62  ;;  %v1030_v36 = vmul.f32 %v2953_v26, %v2635_v39  ;;  %v1031_v50 = vmul.f32 %v2953_v26, %v2637_v19  ;;  %v3769_v27 = vld [vmem:[#allocation19_spill] sm:$0xff] }
 0x18f   : > { %v1090_v15 = vmul.f32 %v1012_v16, %v3751_v33  ;;  %v1091_v30 = vmul.f32 %v1013_v56, %v3753_v12  ;;  %v1092_v0 = vmul.f32 %v1014_v42, %v3755_v35  ;;  %v3759_v13 = vsub.f32 %v3758_v41, %v3750_v62  ;;  %v3771_v41 = vld [vmem:[#allocation52_spill] sm:$0xff] }
 0x190   : > { %v1093_v61 = vmul.f32 %v1015_v32, %v3757_v23  ;;  %v3761_v34 = vsub.f32 %v3760_v31, %v3750_v62  ;;  %v1032_v2 = vmul.f32 %v2953_v26, %v2639_v55  ;;  %v1033_v16 = vmul.f32 %v2953_v26, %v2641_v9 }
 0x191   : > { %v1094_v38 = vmul.f32 %v1016_v10, %v3759_v13  ;;  %v1200_v48 = vadd.f32 %v2643_v40, %v1090_v15  ;;  %v1201_v6 = vadd.f32 %v2653_v51, %v1091_v30  ;;  %v1202_v5 = vadd.f32 %v2655_v58, %v1092_v0  ;;  %v793_v15 = vpop.xlane.xlu1 %792 }
 0x192   : > { %v1095_v7 = vmul.f32 %v1017_v45, %v3761_v34  ;;  %v1203_v25 = vadd.f32 %v2657_v28, %v1093_v61  ;;  %v1034_v63 = vmul.f32 %v2953_v26, %v2649_v44  ;;  %v1035_v4 = vmul.f32 %v2953_v26, %v2651_v22 }
 0x193   : > { %v1204_v56 = vadd.f32 %v2659_v21, %v1094_v38  ;;  %1278 = vst [vmem:[%s2869_s26 + $0xf0] sm:$0xff] %v1200_v48  ;;  %1279 = vst [vmem:[%s2869_s26 + $0xf8] sm:$0xff] %v1201_v6  ;;  %v3762_v1 = vsub.f32 %v2396_v43, %v2783_v52  ;;  %v3763_v53 = vsub.f32 %v2398_v18, %v2783_v52  ;;  %v805_v0 = vmul.f32 0.0013020834, %v786_v46  ;;  %v3774_v6 = vld [vmem:[#allocation55_spill] sm:$0xff] }
 0x194   : > { %v1205_v54 = vadd.f32 %v2661_v49, %v1095_v7  ;;  %1280 = vst [vmem:[%s2869_s26 + $0x100] sm:$0xff] %v1202_v5  ;;  %1281 = vst [vmem:[%s2869_s26 + $0x108] sm:$0xff] %v1203_v25  ;;  %v3764_v32 = vsub.f32 %v2400_v11, %v2783_v52  ;;  %v3765_v45 = vsub.f32 %v2414_v57, %v2783_v52  ;;  %v853_v11 = vadd.f32 1e-05, %v2858_v47  ;;  %v3773_v7 = vld [vmem:[#allocation54_spill] sm:$0xff]  ;;  %v3775_v25 = vld [vmem:[#allocation56_spill] sm:$0xff] }
 0x195   : > { %v1108_v59 = vmul.f32 %v1030_v36, %v3762_v1  ;;  %v1109_v42 = vmul.f32 %v1031_v50, %v3763_v53  ;;  %1282 = vst [vmem:[%s2869_s26 + $0x110] sm:$0xff] %v1204_v56  ;;  %v3766_v26 = vsub.f32 %v2421_v20, %v2783_v52  ;;  %v3767_v18 = vsub.f32 %v2423_v14, %v2783_v52  ;;  %v3770_v50 = vld [vmem:[#allocation17_spill] sm:$0xff]  ;;  %v3778_v1 = vld [vmem:[#allocation63_spill] sm:$0xff]  ;;  %v3779_v53 = vld [vmem:[#allocation64_spill] sm:$0xff] }
 0x196   : > { %v1110_v10 = vmul.f32 %v1032_v2, %v3764_v32  ;;  %v1111_v29 = vmul.f32 %v1033_v16, %v3765_v45  ;;  %1283 = vst [vmem:[%s2869_s26 + $0x118] sm:$0xff] %v1205_v54  ;;  %v3768_v57 = vsub.f32 %v2818_v3, %v2822_v60  ;;  %1570 = vrsqrt.f32 %v853_v11  ;;  %v3776_v16 = vld [vmem:[#allocation57_spill] sm:$0xff]  ;;  %v3781_v45 = vld [vmem:[#allocation66_spill] sm:$0xff] }
 0x197   : > { %v1112_v43 = vmul.f32 %v1034_v63, %v3766_v26  ;;  %v1113_v62 = vmul.f32 %v1035_v4, %v3767_v18  ;;  %v1218_v12 = vadd.f32 %v2643_v40, %v1108_v59  ;;  %v1219_v20 = vadd.f32 %v2653_v51, %v1109_v42  ;;  %v3777_v4 = vld [vmem:[#allocation18_spill] sm:$0xff]  ;;  %v3780_v32 = vld [vmem:[#allocation65_spill] sm:$0xff]  ;;  %v3782_v26 = vld [vmem:[#allocation67_spill] sm:$0xff] }
 0x198   : > { %v843_v33 = vmax.f32 %v3768_v57, 0.0  ;;  %v1220_v30 = vadd.f32 %v2655_v58, %v1110_v10  ;;  %v1221_v14 = vadd.f32 %v2657_v28, %v1111_v29  ;;  %v803_v3 = vmul.f32 0.0013020834, %v772_v17  ;;  %v3772_v17 = vld [vmem:[#allocation53_spill] sm:$0xff]  ;;  %v3783_v18 = vld [vmem:[#allocation68_spill] sm:$0xff]  ;;  %v3784_v11 = vld [vmem:[#allocation22_spill] sm:$0xff] }
 0x199   : > { %v1222_v52 = vadd.f32 %v2659_v21, %v1112_v43  ;;  %v1223_v47 = vadd.f32 %v2661_v49, %v1113_v62  ;;  %1296 = vst [vmem:[%s2869_s26 + $0x180] sm:$0xff] %v1218_v12  ;;  %1297 = vst [vmem:[%s2869_s26 + $0x188] sm:$0xff] %v1219_v20  ;;  %v806_v60 = vmul.f32 0.0013020834, %v793_v15  ;;  %v819_v35 = vmul.f32 %v2825_v8, %v2825_v8  ;;  %v3785_v57 = vld [vmem:[#allocation69_spill] sm:$0xff]  ;;  %v3786_v15 = vld [vmem:[#allocation70_spill] sm:$0xff] }
 0x19a   : > { %v856_v37 = vadd.f32 1e-05, %v843_v33  ;;  %1298 = vst [vmem:[%s2869_s26 + $0x190] sm:$0xff] %v1220_v30  ;;  %1299 = vst [vmem:[%s2869_s26 + $0x198] sm:$0xff] %v1221_v14  ;;  %v829_v23 = vsub.f32 %v803_v3, %v3769_v27  ;;  %v831_v36 = vsub.f32 %v805_v0, %v2829_v24  ;;  %v914_v13 = vsub.f32 %v3771_v41, %v3770_v50  ;;  %v3787_v12 = vld [vmem:[#allocation71_spill] sm:$0xff]  ;;  %v3788_v30 = vld [vmem:[#allocation73_spill] sm:$0xff] }
 0x19b   : > { %1300 = vst [vmem:[%s2869_s26 + $0x1a0] sm:$0xff] %v1222_v52  ;;  %1301 = vst [vmem:[%s2869_s26 + $0x1a8] sm:$0xff] %v1223_v47  ;;  %v832_v61 = vsub.f32 %v806_v60, %v819_v35  ;;  %v915_v34 = vsub.f32 %v3772_v17, %v3770_v50  ;;  %v916_v48 = vsub.f32 %v3773_v7, %v3770_v50  ;;  %v3789_v52 = vld [vmem:[#allocation74_spill] sm:$0xff]  ;;  %v3791_v60 = vld [vmem:[#allocation20_spill] sm:$0xff] }
 0x19c   : > { %1572 = vrsqrt.f32 %v856_v37  ;;  %v842_v38 = vmax.f32 %v829_v23, 0.0  ;;  %v917_v5 = vsub.f32 %v3774_v6, %v3770_v50  ;;  %v918_v2 = vsub.f32 %v3775_v25, %v3770_v50  ;;  %v3790_v37 = vld [vmem:[#allocation75_spill] sm:$0xff]  ;;  %v3792_v35 = vld [vmem:[#allocation76_spill] sm:$0xff]  ;;  %v3793_v23 = vld [vmem:[#allocation77_spill] sm:$0xff] }
 0x19d   : > { %v845_v31 = vmax.f32 %v832_v61, 0.0  ;;  %v919_v24 = vsub.f32 %v3776_v16, %v3770_v50  ;;  %v844_v63 = vmax.f32 %v831_v36, 0.0  ;;  %v926_v59 = vsub.f32 %v3778_v1, %v3777_v4  ;;  %v3794_v36 = vld [vmem:[#allocation78_spill] sm:$0xff]  ;;  %v3795_v41 = vld [vmem:[#allocation79_spill] sm:$0xff]  ;;  %v3798_v16 = vld [vmem:[#allocation81_spill] sm:$0xff] }
 0x19e   : > { %v855_v56 = vadd.f32 1e-05, %v842_v38  ;;  %v927_v42 = vsub.f32 %v3779_v53, %v3777_v4  ;;  %v932_v0 = vsub.f32 %v3792_v35, %v3791_v60  ;;  %v933_v61 = vsub.f32 %v3793_v23, %v3791_v60  ;;  %v3797_v6 = vld [vmem:[#allocation83_spill] sm:$0xff]  ;;  %v3800_v35 = vld [vmem:[#allocation84_spill] sm:$0xff] }
 0x19f   : > { %v858_v54 = vadd.f32 1e-05, %v845_v31  ;;  %v857_v27 = vadd.f32 1e-05, %v844_v63  ;;  %v934_v50 = vsub.f32 %v3794_v36, %v3791_v60  ;;  %v935_v38 = vsub.f32 %v3795_v41, %v3791_v60  ;;  %v3796_v31 = vld [vmem:[#allocation80_spill] sm:$0xff] }
 0x1a0   : > { %1574 = vrsqrt.f32 %v855_v56  ;;  %v936_v17 = vsub.f32 %v3796_v31, %v3791_v60  ;;  %v937_v25 = vsub.f32 %v3797_v6, %v3791_v60  ;;  %v3801_v60 = vld [vmem:[#allocation85_spill] sm:$0xff] }
 0x1a1   : > { %1576 = vrsqrt.f32 %v858_v54  ;;  %v3799_v54 = vld [vmem:[#allocation82_spill] sm:$0xff] }
 0x1a2   : > { %1578 = vrsqrt.f32 %v857_v27 }
 0x1a3   : > { %v1571_v7 = vpop.eup %1570 }
 0x1a4   : > { %v1024_v36 = vmul.f32 %v1571_v7, %v2635_v39  ;;  %v1025_v41 = vmul.f32 %v1571_v7, %v2637_v19  ;;  %v1026_v3 = vmul.f32 %v1571_v7, %v2639_v55  ;;  %v1027_v31 = vmul.f32 %v1571_v7, %v2641_v9 }
 0x1a5   : > { %v1028_v14 = vmul.f32 %v1571_v7, %v2649_v44  ;;  %v1029_v20 = vmul.f32 %v1571_v7, %v2651_v22  ;;  %v3803_v7 = vld [vmem:[#allocation87_spill] sm:$0xff] }
 0x1a6   : > { %v1102_v46 = vmul.f32 %v1024_v36, %v914_v13  ;;  %v1103_v33 = vmul.f32 %v1025_v41, %v915_v34  ;;  %v1104_v23 = vmul.f32 %v1026_v3, %v916_v48  ;;  %v1105_v63 = vmul.f32 %v1027_v31, %v917_v5 }
 0x1a7   : > { %v1106_v56 = vmul.f32 %v1028_v14, %v918_v2  ;;  %v1107_v62 = vmul.f32 %v1029_v20, %v919_v24  ;;  %v3802_v14 = vld [vmem:[#allocation86_spill] sm:$0xff] }
 0x1a8   : > { %v1212_v6 = vadd.f32 %v2643_v40, %v1102_v46  ;;  %v1213_v10 = vadd.f32 %v2653_v51, %v1103_v33  ;;  %v1214_v27 = vadd.f32 %v2655_v58, %v1104_v23  ;;  %v1215_v13 = vadd.f32 %v2657_v28, %v1105_v63 }
 0x1a9   : > { %v1573_v47 = vpop.eup %1572  ;;  %v1216_v34 = vadd.f32 %v2659_v21, %v1106_v56  ;;  %v1217_v48 = vadd.f32 %v2661_v49, %v1107_v62  ;;  %v948_v3 = vsub.f32 %v3802_v14, %v2825_v8  ;;  %v949_v62 = vsub.f32 %v3803_v7, %v2825_v8 }
 0x1aa   : > { %v1042_v43 = vmul.f32 %v1573_v47, %v2635_v39  ;;  %v1043_v29 = vmul.f32 %v1573_v47, %v2637_v19  ;;  %v1044_v5 = vmul.f32 %v1573_v47, %v2639_v55  ;;  %v1045_v2 = vmul.f32 %v1573_v47, %v2641_v9  ;;  %1290 = vst [vmem:[%s2869_s26 + $0x150] sm:$0xff] %v1212_v6 }
 0x1ab   : > { %1291 = vst [vmem:[%s2869_s26 + $0x158] sm:$0xff] %v1213_v10  ;;  %1292 = vst [vmem:[%s2869_s26 + $0x160] sm:$0xff] %v1214_v27  ;;  %v1046_v24 = vmul.f32 %v1573_v47, %v2649_v44  ;;  %v1047_v33 = vmul.f32 %v1573_v47, %v2651_v22 }
 0x1ac   : > { %1293 = vst [vmem:[%s2869_s26 + $0x168] sm:$0xff] %v1215_v13  ;;  %v1120_v46 = vmul.f32 %v1042_v43, %v932_v0  ;;  %v1121_v20 = vmul.f32 %v1043_v29, %v933_v61  ;;  %1294 = vst [vmem:[%s2869_s26 + $0x170] sm:$0xff] %v1216_v34  ;;  %v1122_v56 = vmul.f32 %v1044_v5, %v934_v50 }
 0x1ad   : > { %1295 = vst [vmem:[%s2869_s26 + $0x178] sm:$0xff] %v1217_v48  ;;  %v1123_v10 = vmul.f32 %v1045_v2, %v935_v38  ;;  %v1575_v63 = vpop.eup %1574  ;;  %v1124_v23 = vmul.f32 %v1046_v24, %v936_v17  ;;  %v1125_v36 = vmul.f32 %v1047_v33, %v937_v25  ;;  %v3804_v48 = vsub.f32 %v3780_v32, %v3777_v4 }
 0x1ae   : > { %v1230_v43 = vadd.f32 %v2643_v40, %v1120_v46  ;;  %v1231_v29 = vadd.f32 %v2653_v51, %v1121_v20  ;;  %v1577_v47 = vpop.eup %1576  ;;  %v1232_v0 = vadd.f32 %v2655_v58, %v1122_v56  ;;  %v1036_v41 = vmul.f32 %v1575_v63, %v2635_v39 }
 0x1af   : > { %v1233_v61 = vadd.f32 %v2657_v28, %v1123_v10  ;;  %v1037_v50 = vmul.f32 %v1575_v63, %v2637_v19  ;;  %v1234_v38 = vadd.f32 %v2659_v21, %v1124_v23  ;;  %v1235_v17 = vadd.f32 %v2661_v49, %v1125_v36  ;;  %v1579_v20 = vpop.eup %1578 }
 0x1b0   : > { %1308 = vst [vmem:[%s2869_s26 + $0x1e0] sm:$0xff] %v1230_v43  ;;  %1309 = vst [vmem:[%s2869_s26 + $0x1e8] sm:$0xff] %v1231_v29  ;;  %v1038_v25 = vmul.f32 %v1575_v63, %v2639_v55  ;;  %v1039_v31 = vmul.f32 %v1575_v63, %v2641_v9  ;;  %v1040_v6 = vmul.f32 %v1575_v63, %v2649_v44 }
 0x1b1   : > { %1310 = vst [vmem:[%s2869_s26 + $0x1f0] sm:$0xff] %v1232_v0  ;;  %1311 = vst [vmem:[%s2869_s26 + $0x1f8] sm:$0xff] %v1233_v61  ;;  %v1041_v27 = vmul.f32 %v1575_v63, %v2651_v22  ;;  %v1114_v13 = vmul.f32 %v1036_v41, %v926_v59  ;;  %v1115_v34 = vmul.f32 %v1037_v50, %v927_v42 }
 0x1b2   : > { %1312 = vst [vmem:[%s2869_s26 + $0x200] sm:$0xff] %v1234_v38  ;;  %1313 = vst [vmem:[%s2869_s26 + $0x208] sm:$0xff] %v1235_v17  ;;  %v1116_v5 = vmul.f32 %v1038_v25, %v3804_v48  ;;  %v3805_v2 = vsub.f32 %v3781_v45, %v3777_v4  ;;  %v1054_v33 = vmul.f32 %v1577_v47, %v2635_v39 }
 0x1b3   : > { %v1055_v1 = vmul.f32 %v1577_v47, %v2637_v19  ;;  %v3806_v59 = vsub.f32 %v3782_v26, %v3777_v4  ;;  %v3807_v42 = vsub.f32 %v3783_v18, %v3777_v4  ;;  %v1224_v46 = vadd.f32 %v2643_v40, %v1114_v13 }
 0x1b4   : > { %v1117_v24 = vmul.f32 %v1039_v31, %v3805_v2  ;;  %v1225_v45 = vadd.f32 %v2653_v51, %v1115_v34  ;;  %v1226_v14 = vadd.f32 %v2655_v58, %v1116_v5  ;;  %v1056_v26 = vmul.f32 %v1577_v47, %v2639_v55 }
 0x1b5   : > { %v1118_v53 = vmul.f32 %v1040_v6, %v3806_v59  ;;  %v1119_v32 = vmul.f32 %v1041_v27, %v3807_v42  ;;  %v1057_v56 = vmul.f32 %v1577_v47, %v2641_v9  ;;  %1302 = vst [vmem:[%s2869_s26 + $0x1b0] sm:$0xff] %v1224_v46  ;;  %v1058_v18 = vmul.f32 %v1577_v47, %v2649_v44 }
 0x1b6   : > { %v1227_v7 = vadd.f32 %v2657_v28, %v1117_v24  ;;  %1303 = vst [vmem:[%s2869_s26 + $0x1b8] sm:$0xff] %v1225_v45  ;;  %v1059_v63 = vmul.f32 %v1577_v47, %v2651_v22  ;;  %1304 = vst [vmem:[%s2869_s26 + $0x1c0] sm:$0xff] %v1226_v14  ;;  %v3808_v23 = vsub.f32 %v3798_v16, %v2825_v8 }
 0x1b7   : > { %v1228_v10 = vadd.f32 %v2659_v21, %v1118_v53  ;;  %v1229_v4 = vadd.f32 %v2661_v49, %v1119_v32  ;;  %v3809_v43 = vsub.f32 %v3799_v54, %v2825_v8  ;;  %v3810_v0 = vsub.f32 %v3800_v35, %v2825_v8 }
 0x1b8   : > { %1305 = vst [vmem:[%s2869_s26 + $0x1c8] sm:$0xff] %v1227_v7  ;;  %v1132_v36 = vmul.f32 %v1054_v33, %v3808_v23  ;;  %v3811_v41 = vsub.f32 %v3801_v60, %v2825_v8  ;;  %v1136_v16 = vmul.f32 %v1058_v18, %v948_v3  ;;  %v1137_v47 = vmul.f32 %v1059_v63, %v949_v62 }
 0x1b9   : > { %v1133_v29 = vmul.f32 %v1055_v1, %v3809_v43  ;;  %v1134_v61 = vmul.f32 %v1056_v26, %v3810_v0  ;;  %1306 = vst [vmem:[%s2869_s26 + $0x1d0] sm:$0xff] %v1228_v10  ;;  %1307 = vst [vmem:[%s2869_s26 + $0x1d8] sm:$0xff] %v1229_v4  ;;  %v1048_v54 = vmul.f32 %v1579_v20, %v2635_v39 }
 0x1ba   : > { %v1135_v50 = vmul.f32 %v1057_v56, %v3811_v41  ;;  %v1049_v38 = vmul.f32 %v1579_v20, %v2637_v19  ;;  %v1242_v35 = vadd.f32 %v2643_v40, %v1132_v36  ;;  %v1246_v25 = vadd.f32 %v2659_v21, %v1136_v16 }
 0x1bb   : > { %v1243_v17 = vadd.f32 %v2653_v51, %v1133_v29  ;;  %v1244_v8 = vadd.f32 %v2655_v58, %v1134_v61  ;;  %v1247_v3 = vadd.f32 %v2661_v49, %v1137_v47  ;;  %v1050_v62 = vmul.f32 %v1579_v20, %v2639_v55 }
 0x1bc   : > { %v1245_v60 = vadd.f32 %v2657_v28, %v1135_v50  ;;  %v1051_v39 = vmul.f32 %v1579_v20, %v2641_v9  ;;  %1320 = vst [vmem:[%s2869_s26 + $0x240] sm:$0xff] %v1242_v35  ;;  %v1052_v19 = vmul.f32 %v1579_v20, %v2649_v44  ;;  %v1053_v31 = vmul.f32 %v1579_v20, %v2651_v22 }
 0x1bd   : > { %1321 = vst [vmem:[%s2869_s26 + $0x248] sm:$0xff] %v1243_v17  ;;  %1322 = vst [vmem:[%s2869_s26 + $0x250] sm:$0xff] %v1244_v8  ;;  %v3812_v6 = vsub.f32 %v3785_v57, %v3784_v11  ;;  %v3813_v13 = vsub.f32 %v3786_v15, %v3784_v11  ;;  %v3814_v55 = vsub.f32 %v3787_v12, %v3784_v11 }
 0x1be   : > { %1323 = vst [vmem:[%s2869_s26 + $0x258] sm:$0xff] %v1245_v60  ;;  %1324 = vst [vmem:[%s2869_s26 + $0x260] sm:$0xff] %v1246_v25  ;;  %v3815_v44 = vsub.f32 %v3788_v30, %v3784_v11  ;;  %v3816_v57 = vsub.f32 %v3789_v52, %v3784_v11  ;;  %v3817_v48 = vsub.f32 %v3790_v37, %v3784_v11 }
 0x1bf   : > { %v1126_v27 = vmul.f32 %v1048_v54, %v3812_v6  ;;  %v1127_v34 = vmul.f32 %v1049_v38, %v3813_v13  ;;  %1325 = vst [vmem:[%s2869_s26 + $0x268] sm:$0xff] %v1247_v3  ;;  %v1128_v9 = vmul.f32 %v1050_v62, %v3814_v55 }
 0x1c0   : > { %v1129_v22 = vmul.f32 %v1051_v39, %v3815_v44  ;;  %v1130_v15 = vmul.f32 %v1052_v19, %v3816_v57  ;;  %v1131_v5 = vmul.f32 %v1053_v31, %v3817_v48 }
 0x1c1   : > { %v1236_v2 = vadd.f32 %v2643_v40, %v1126_v27  ;;  %v1237_v12 = vadd.f32 %v2653_v51, %v1127_v34  ;;  %v1238_v24 = vadd.f32 %v2655_v58, %v1128_v9 }
 0x1c2   : > { %v1239_v30 = vadd.f32 %v2657_v28, %v1129_v22  ;;  %v1240_v11 = vadd.f32 %v2659_v21, %v1130_v15  ;;  %v1241_v40 = vadd.f32 %v2661_v49, %v1131_v5 }
 0x1c3   : > { %1314 = vst [vmem:[%s2869_s26 + $0x210] sm:$0xff] %v1236_v2  ;;  %1315 = vst [vmem:[%s2869_s26 + $0x218] sm:$0xff] %v1237_v12 }
 0x1c4   : > { %1316 = vst [vmem:[%s2869_s26 + $0x220] sm:$0xff] %v1238_v24  ;;  %1317 = vst [vmem:[%s2869_s26 + $0x228] sm:$0xff] %v1239_v30 }
 0x1c5   : > { %1318 = vst [vmem:[%s2869_s26 + $0x230] sm:$0xff] %v1240_v11  ;;  %1319 = vst [vmem:[%s2869_s26 + $0x238] sm:$0xff] %v1241_v40 }
 0x1c6   : > { %1701 = shalt.err (!%p1698_p7)
}
 0x1c7   : > { %s1702_s8 = scalar_lea.hbm %s3354_s23, 9984  ;;  %s1706_s7 = scalar_lea.hbm %s3411_s4, 19968 }
 0x1c8   : > { %p1703_p11 = scmp.ne.s32.totalorder %s3354_s23, %s1702_s8  ;;  %p1707_p2 = scmp.lt.s32.totalorder %s3354_s23, %s3411_s4 }
 0x1c9   : > { %p1708_p0 = scmp.lt.s32.totalorder %s1706_s7, %s1702_s8 }
 0x1ca   : > { %p1704_p8 = pnand %p1703_p11, %p3818_p9 }
 0x1cb   : > { %p1709_p4 = por %p1708_p0, %p1707_p2 }
 0x1cc   : > { %p1705_p3 = pneg %p1704_p8 }
 0x1ce   : > { %p1710_p5 = pnand %p1709_p4, %p1705_p3 }
 0x1d0   : > { %1713 = shalt.err (!%p1710_p5)
}
 0x1d1   : > { %s1773_s20 = smov 768   ;;  %s1774_s26 = smov 48  }
 0x1d2   : > { %1487 = dma.vmem_to_hbm [thread:$0]  (%p3818_p9), %s3356_s13, 9984, %s3354_s23, %s1327_s9, %s1773_s20, %s1773_s20, %s1774_s26  }
 0x1d3 PF: > { %s1356_s22 = sand.u32 1, %s1752_s15   ;;  %p3819_p10 = scmp.ne.s32.totalorder %s3556_s28, 0 }
 0x1d4   : > { %p3820_p1 = scmp.ge.s32.totalorder %s1764_s18, 2  ;;  %s1357_s19 = scalar_lea.sflag [#allocation4], %s1356_s22 }
 0x1d6   : > { %p1504_p6 = pnand %p3820_p1, %p3819_p10 }
 0x1d8   : > { %p1505_p12 = pneg %p1504_p6 }
 0x1da   : > { %1747 = dma.done.wait (%p1505_p12), %s1357_s19, 9984  }
 0x1db   : > { %1749 = vsyncadd (%p1505_p12), %s1357_s19, 4294957312  ;;  %p21_p13 = scmp.ge.s32.totalorder %s1825_s21, 4   ;;  %s3821_s15 = smov %s1756_s16 }
 0x1dc   : > { %s3822_s16 = smov %s1760_s17  ;;  %s3823_s17 = smov %s1837_s24 }
 0x1dd   : > { %s3824_s18 = smov %s1825_s21  ;;  %23 = sbr.rel (!%p21_p13) target bundleno = 10 (0xa), region = 102 }
 0x1e2   :  { %1362 = vsyncpa [#allocation3], 1 }
 0x1e3   :  { %1364 = vsyncpa [#allocation3 + $0x1], 1 }
 0x1e4   :  { %1365 = vsyncpa [#allocation6], 1 }
 0x1e5   :  { %1367 = vsyncpa [#allocation6 + $0x1], 1 }
 0x1e6   :  { %1368 = vsyncpa [#allocation9], 1 }
 0x1e7   :  { %1369 = vsyncpa [#allocation4], 1 }
 0x1e8   :  { %1371 = vsyncpa [#allocation4 + $0x1], 1 }

</bundles_post_ra>
